<compile_context>
chip_gen: v7x
topology: tpu7x:2x2x1
jax: 0.10.0
libtpu: 0.0.40
codegen_flags: <defaults>
</compile_context>

<pallas_src>
import functools
import math

import jax
import jax.numpy as jnp
from jax import lax
from jax.experimental import pallas as pl
from jax.experimental.pallas import tpu as pltpu


# ---------------------------------------------------------------------------
# One separable 3-tap conv along the flattened H*W lane dim as a single MXU
# matmul on tap-stacked inputs/weights.
#   x      : (Cin, M)  f32 activation, lanes = flattened H*W
#   w_stk  : (Cout, 3*Cin) bf16, tap-major (matches concat order below)
#   b      : (Cout, 1) f32 bias
#   s      : static lane shift (W*dil for (3,1) convs, dil for (1,3) convs)
#   m_lo/m_hi : (1, M) bool validity masks for the shifted copies ("same" pad)
# ---------------------------------------------------------------------------
def _sep3_stacked(x, w_stk, b, s, m_lo, m_hi):
    _, m = x.shape
    x_lo = jnp.where(m_lo, pltpu.roll(x, shift=s, axis=1), 0.0)       # x[p - s]
    x_hi = jnp.where(m_hi, pltpu.roll(x, shift=m - s, axis=1), 0.0)   # x[p + s]
    x_stk = jnp.concatenate([x_lo, x, x_hi], axis=0).astype(jnp.bfloat16)
    return jnp.dot(w_stk, x_stk, preferred_element_type=jnp.float32) + b


# ---------------------------------------------------------------------------
# In-kernel BatchNorm fold (training-mode, biased batch variance).
#   s_ref/q_ref : (N, C, 1) per-image partial sums / sums of squares
#   g_ref/be_ref: (C, 1) affine params
# ---------------------------------------------------------------------------
def _bn_scale_shift(s_ref, q_ref, g_ref, be_ref, inv_count, eps):
    s = jnp.sum(s_ref[...], axis=0)                      # (C, 1)
    q = jnp.sum(q_ref[...], axis=0)                      # (C, 1)
    mean = s * inv_count
    var = q * inv_count - mean * mean
    scale = g_ref[...] * lax.rsqrt(var + eps)
    shift = be_ref[...] - mean * scale
    return scale, shift


# ---------------------------------------------------------------------------
# Kernel 1: conv3x1_1 + bias + ReLU + conv1x3_1 + bias, per-image BN1 partial
#           sums.  All activations (C, HW) lane-dense.
# ---------------------------------------------------------------------------
def _stage1_kernel(x_ref, w1_ref, b1_ref, w2_ref, b2_ref,
                   y1_ref, s1_ref, q1_ref, *, W, m):
    x = x_ref[0]                                          # (C, HW) f32
    col = lax.broadcasted_iota(jnp.int32, (1, m), 1)      # flat position p
    # conv3x1_1: vertical taps -> lane shift by one image row (W)
    h1 = _sep3_stacked(x, w1_ref[...], b1_ref[...], W, col >= W, col < m - W)
    h1 = jnp.maximum(h1, 0.0)                             # ReLU
    # conv1x3_1: horizontal taps -> lane shift by 1, masked at row boundaries
    cmod = col % W
    h2 = _sep3_stacked(h1, w2_ref[...], b2_ref[...], 1, cmod >= 1, cmod < W - 1)
    y1_ref[0] = h2.astype(jnp.bfloat16)                   # pre-BN1 activation
    s1_ref[0] = jnp.sum(h2, axis=1, keepdims=True)
    q1_ref[0] = jnp.sum(h2 * h2, axis=1, keepdims=True)


# ---------------------------------------------------------------------------
# Kernel 2: BN1(affine, folded in-kernel) + ReLU + conv3x1_2(dil) + ReLU
#           + conv1x3_2(dil), per-image BN2 partial sums.
# ---------------------------------------------------------------------------
def _stage2_kernel(y1_ref, s1_ref, q1_ref, g1_ref, be1_ref,
                   w3_ref, b3_ref, w4_ref, b4_ref,
                   y2_ref, s2_ref, q2_ref, *, W, m, d, inv_count, eps):
    scale, shift = _bn_scale_shift(s1_ref, q1_ref, g1_ref, be1_ref,
                                   inv_count, eps)
    z = y1_ref[0].astype(jnp.float32) * scale + shift     # BN1
    z = jnp.maximum(z, 0.0)                               # ReLU
    col = lax.broadcasted_iota(jnp.int32, (1, m), 1)
    sv = d * W                                            # dilated row shift
    h3 = _sep3_stacked(z, w3_ref[...], b3_ref[...], sv, col >= sv, col < m - sv)
    h3 = jnp.maximum(h3, 0.0)                             # ReLU
    cmod = col % W
    h4 = _sep3_stacked(h3, w4_ref[...], b4_ref[...], d, cmod >= d, cmod < W - d)
    y2_ref[0] = h4.astype(jnp.bfloat16)                   # pre-BN2 activation
    s2_ref[0] = jnp.sum(h4, axis=1, keepdims=True)
    q2_ref[0] = jnp.sum(h4 * h4, axis=1, keepdims=True)


# ---------------------------------------------------------------------------
# Kernel 3: BN2(affine, folded in-kernel) + residual add + ReLU, written
#           directly in NCHW-native (C, HW) lane-dense layout.
# ---------------------------------------------------------------------------
def _stage3_kernel(y2_ref, s2_ref, q2_ref, g2_ref, be2_ref, x_ref, o_ref,
                   *, inv_count, eps):
    scale, shift = _bn_scale_shift(s2_ref, q2_ref, g2_ref, be2_ref,
                                   inv_count, eps)
    a = y2_ref[0].astype(jnp.float32) * scale + shift     # (C, HW)
    o_ref[0] = jnp.maximum(a + x_ref[0], 0.0)             # residual + ReLU


# ---------------------------------------------------------------------------
# Wrapper helpers
# ---------------------------------------------------------------------------
def _stack_taps(wt):
    # torch Conv2d weight (Cout, Cin, 3, 1) / (Cout, Cin, 1, 3)
    #   -> (Cout, 3*Cin) bf16, tap-major (tap0 | tap1 | tap2) to match
    #      concat([x_lo, x, x_hi], axis=0) inside _sep3_stacked.
    co, ci = wt.shape[0], wt.shape[1]
    w3 = wt.reshape(co, ci, 3)                      # (Cout, Cin, tap)
    return jnp.transpose(w3, (0, 2, 1)).reshape(co, 3 * ci).astype(jnp.bfloat16)


def _col(v):
    return v.reshape(-1, 1).astype(jnp.float32)     # (C,) -> (C, 1)


def _block_bytes(specs):
    return sum(math.prod(shape) * jnp.dtype(dt).itemsize for shape, dt in specs)


def _compiler_params(block_bytes):
    # Double-buffered pipeline blocks + headroom for in-kernel temporaries;
    # clamp to [32 MiB, 64 MiB] so it is valid on v5e/v6e/v7x alike.
    limit = 2 * block_bytes + (16 << 20)
    limit = int(min(max(limit, 32 << 20), 64 << 20))
    return pltpu.CompilerParams(dimension_semantics=("parallel",),
                                vmem_limit_bytes=limit)


# ---------------------------------------------------------------------------
# Forward pass
# ---------------------------------------------------------------------------
@functools.partial(jax.jit, static_argnames=("dilated", "eps"))
def non_bottleneck_1d_fwd(x_nchw, w1, b1, w2, b2, g1, be1,
                          w3, b3, w4, b4, g2, be2, dilated, eps=1e-3):
    """x_nchw: (N, C, H, W) f32. Returns (N, C, H, W) f32."""
    n, c, h, w = x_nchw.shape
    hw = h * w
    d = int(dilated)
    c0, c1, c2 = w1.shape[0], w2.shape[0], w3.shape[0]
    f32, bf16 = jnp.float32, jnp.bfloat16
    inv_count = 1.0 / float(n * hw)

    w1k, w2k, w3k, w4k = map(_stack_taps, (w1, w2, w3, w4))
    b1r, b2r, b3r, b4r = map(_col, (b1, b2, b3, b4))
    g1r, be1r, g2r, be2r = map(_col, (g1, be1, g2, be2))

    x_r = x_nchw.reshape(n, c, hw)                 # metadata-only reshape

    # --- stage 1 -----------------------------------------------------------
    bytes1 = _block_bytes([((1, c, hw), f32), ((c0, 3 * c), bf16), ((c0, 1), f32),
                           ((c1, 3 * c0), bf16), ((c1, 1), f32),
                           ((1, c1, hw), bf16), ((1, c1, 1), f32),
                           ((1, c1, 1), f32)])
    y1, s1, q1 = pl.pallas_call(
        functools.partial(_stage1_kernel, W=w, m=hw),
        grid=(n,),
        in_specs=[
            pl.BlockSpec((1, c, hw), lambda b: (b, 0, 0)),
            pl.BlockSpec((c0, 3 * c), lambda b: (0, 0)),
            pl.BlockSpec((c0, 1), lambda b: (0, 0)),
            pl.BlockSpec((c1, 3 * c0), lambda b: (0, 0)),
            pl.BlockSpec((c1, 1), lambda b: (0, 0)),
        ],
        out_shape=(
            jax.ShapeDtypeStruct((n, c1, hw), bf16),
            jax.ShapeDtypeStruct((n, c1, 1), f32),
            jax.ShapeDtypeStruct((n, c1, 1), f32),
        ),
        out_specs=(
            pl.BlockSpec((1, c1, hw), lambda b: (b, 0, 0)),
            pl.BlockSpec((1, c1, 1), lambda b: (b, 0, 0)),
            pl.BlockSpec((1, c1, 1), lambda b: (b, 0, 0)),
        ),
        compiler_params=_compiler_params(bytes1),
    )(x_r, w1k, b1r, w2k, b2r)

    # --- stage 2 -----------------------------------------------------------
    bytes2 = _block_bytes([((1, c1, hw), bf16), ((n, c1, 1), f32),
                           ((n, c1, 1), f32), ((c1, 1), f32), ((c1, 1), f32),
                           ((c2, 3 * c1), bf16), ((c2, 1), f32),
                           ((c, 3 * c2), bf16), ((c, 1), f32),
                           ((1, c, hw), bf16), ((1, c, 1), f32),
                           ((1, c, 1), f32)])
    y2, s2, q2 = pl.pallas_call(
        functools.partial(_stage2_kernel, W=w, m=hw, d=d,
                          inv_count=inv_count, eps=eps),
        grid=(n,),
        in_specs=[
            pl.BlockSpec((1, c1, hw), lambda b: (b, 0, 0)),
            pl.BlockSpec((n, c1, 1), lambda b: (0, 0, 0)),
            pl.BlockSpec((n, c1, 1), lambda b: (0, 0, 0)),
            pl.BlockSpec((c1, 1), lambda b: (0, 0)),
            pl.BlockSpec((c1, 1), lambda b: (0, 0)),
            pl.BlockSpec((c2, 3 * c1), lambda b: (0, 0)),
            pl.BlockSpec((c2, 1), lambda b: (0, 0)),
            pl.BlockSpec((c, 3 * c2), lambda b: (0, 0)),
            pl.BlockSpec((c, 1), lambda b: (0, 0)),
        ],
        out_shape=(
            jax.ShapeDtypeStruct((n, c, hw), bf16),
            jax.ShapeDtypeStruct((n, c, 1), f32),
            jax.ShapeDtypeStruct((n, c, 1), f32),
        ),
        out_specs=(
            pl.BlockSpec((1, c, hw), lambda b: (b, 0, 0)),
            pl.BlockSpec((1, c, 1), lambda b: (b, 0, 0)),
            pl.BlockSpec((1, c, 1), lambda b: (b, 0, 0)),
        ),
        compiler_params=_compiler_params(bytes2),
    )(y1, s1, q1, g1r, be1r, w3k, b3r, w4k, b4r)

    # --- stage 3 -----------------------------------------------------------
    bytes3 = _block_bytes([((1, c, hw), bf16), ((n, c, 1), f32),
                           ((n, c, 1), f32), ((c, 1), f32), ((c, 1), f32),
                           ((1, c, hw), f32), ((1, c, hw), f32)])
    out_r = pl.pallas_call(
        functools.partial(_stage3_kernel, inv_count=inv_count, eps=eps),
        grid=(n,),
        in_specs=[
            pl.BlockSpec((1, c, hw), lambda b: (b, 0, 0)),
            pl.BlockSpec((n, c, 1), lambda b: (0, 0, 0)),
            pl.BlockSpec((n, c, 1), lambda b: (0, 0, 0)),
            pl.BlockSpec((c, 1), lambda b: (0, 0)),
            pl.BlockSpec((c, 1), lambda b: (0, 0)),
            pl.BlockSpec((1, c, hw), lambda b: (b, 0, 0)),
        ],
        out_shape=jax.ShapeDtypeStruct((n, c, hw), f32),
        out_specs=pl.BlockSpec((1, c, hw), lambda b: (b, 0, 0)),
        compiler_params=_compiler_params(bytes3),
    )(y2, s2, q2, g2r, be2r, x_r)

    return out_r.reshape(n, c, h, w)               # metadata-only reshape


# ---------------------------------------------------------------------------
# Pure-JAX f32 reference (training-mode BatchNorm, dropout p=0)
# ---------------------------------------------------------------------------
def _reference(x, w1, b1, w2, b2, g1, be1, w3, b3, w4, b4, g2, be2, d, eps=1e-3):
    def conv(a, wt, pad, dil):
        return lax.conv_general_dilated(
            a, wt, window_strides=(1, 1), padding=pad, rhs_dilation=dil,
            dimension_numbers=("NCHW", "OIHW", "NCHW"))

    def bn(a, g, b):
        mean = a.mean(axis=(0, 2, 3), keepdims=True)
        var = a.var(axis=(0, 2, 3), keepdims=True)
        return ((a - mean) * lax.rsqrt(var + eps)
                * g.reshape(1, -1, 1, 1) + b.reshape(1, -1, 1, 1))

    y = conv(x, w1, ((1, 1), (0, 0)), (1, 1)) + b1.reshape(1, -1, 1, 1)
    y = jax.nn.relu(y)
    y = conv(y, w2, ((0, 0), (1, 1)), (1, 1)) + b2.reshape(1, -1, 1, 1)
    y = jax.nn.relu(bn(y, g1, be1))
    y = conv(y, w3, ((d, d), (0, 0)), (d, 1)) + b3.reshape(1, -1, 1, 1)
    y = jax.nn.relu(y)
    y = conv(y, w4, ((0, 0), (d, d)), (1, d)) + b4.reshape(1, -1, 1, 1)
    y = bn(y, g2, be2)
    return jax.nn.relu(y + x)


if __name__ == "__main__":
    key = jax.random.PRNGKey(0)
    ks = jax.random.split(key, 13)

    N, C, H, W = 2, 16, 16, 16          # chann=16
    D = 2                               # dilation
    C0, C1, C2 = 24, 32, 24             # cpw

    def conv_w(k, co, ci, kh, kw):
        return jax.random.normal(k, (co, ci, kh, kw), jnp.float32) / jnp.sqrt(
            jnp.float32(ci * kh * kw))

    x = jax.random.normal(ks[0], (N, C, H, W), jnp.float32)
    w1 = conv_w(ks[1], C0, C, 3, 1); b1 = 0.1 * jax.random.normal(ks[2], (C0,))
    w2 = conv_w(ks[3], C1, C0, 1, 3); b2 = 0.1 * jax.random.normal(ks[4], (C1,))
    g1 = 1.0 + 0.1 * jax.random.normal(ks[5], (C1,))
    be1 = 0.1 * jax.random.normal(ks[6], (C1,))
    w3 = conv_w(ks[7], C2, C1, 3, 1); b3 = 0.1 * jax.random.normal(ks[8], (C2,))
    w4 = conv_w(ks[9], C, C2, 1, 3); b4 = 0.1 * jax.random.normal(ks[10], (C,))
    g2 = 1.0 + 0.1 * jax.random.normal(ks[11], (C,))
    be2 = 0.1 * jax.random.normal(ks[12], (C,))

    out = non_bottleneck_1d_fwd(x, w1, b1, w2, b2, g1, be1,
                                w3, b3, w4, b4, g2, be2, dilated=D)
    out = jax.block_until_ready(out)

    ref = _reference(x, w1, b1, w2, b2, g1, be1, w3, b3, w4, b4, g2, be2, D)
    assert out.shape == (N, C, H, W), out.shape
    # bf16 MXU / bf16 stored intermediates vs f32 reference -> loose tolerance.
    assert jnp.allclose(out, ref, atol=5e-2, rtol=5e-2), float(
        jnp.max(jnp.abs(out - ref)))

    print("KERNEL_OK")
</pallas_src>

<mosaic_0001>
module attributes {stable_mosaic.version = 11 : i64} {
  func.func @_stage1_kernel(%arg0: i32, %arg1: memref<1x16x256xf32, #tpu.memory_space<vmem>>, %arg2: memref<24x48xbf16, #tpu.memory_space<vmem>>, %arg3: memref<24x1xf32, #tpu.memory_space<vmem>>, %arg4: memref<32x72xbf16, #tpu.memory_space<vmem>>, %arg5: memref<32x1xf32, #tpu.memory_space<vmem>>, %arg6: memref<1x32x256xbf16, #tpu.memory_space<vmem>>, %arg7: memref<1x32x1xf32, #tpu.memory_space<vmem>>, %arg8: memref<1x32x1xf32, #tpu.memory_space<vmem>>) attributes {dimension_semantics = [#tpu.dimension_semantics<parallel>], iteration_bounds = array<i64: 2>, scalar_prefetch = 0 : i64, scratch_operands = 0 : i64, tpu.core_type = #tpu.core_type<tc>, window_params = [{transform_indices = @transform_0, window_bounds = array<i64: 1, 16, 256>}, {pipeline_mode = #tpu.pipeline_mode<synchronous>, transform_indices = @transform_1, window_bounds = array<i64: 24, 48>}, {pipeline_mode = #tpu.pipeline_mode<synchronous>, transform_indices = @transform_2, window_bounds = array<i64: 24, 1>}, {pipeline_mode = #tpu.pipeline_mode<synchronous>, transform_indices = @transform_3, window_bounds = array<i64: 32, 72>}, {pipeline_mode = #tpu.pipeline_mode<synchronous>, transform_indices = @transform_4, window_bounds = array<i64: 32, 1>}, {transform_indices = @transform_5, window_bounds = array<i64: 1, 32, 256>}, {transform_indices = @transform_6, window_bounds = array<i64: 1, 32, 1>}, {transform_indices = @transform_7, window_bounds = array<i64: 1, 32, 1>}]} {
    %c0 = arith.constant 0 : index
    %c0_0 = arith.constant 0 : index
    %c0_1 = arith.constant 0 : index
    %0 = vector.load %arg1[%c0, %c0_0, %c0_1] : memref<1x16x256xf32, #tpu.memory_space<vmem>>, vector<1x16x256xf32>
    %1 = vector.shape_cast %0 : vector<1x16x256xf32> to vector<16x256xf32>
    %2 = tpu.iota {dimensions = array<i32: 1>} : vector<1x256xi32>
    %c0_2 = arith.constant 0 : index
    %c0_3 = arith.constant 0 : index
    %3 = vector.load %arg2[%c0_2, %c0_3] : memref<24x48xbf16, #tpu.memory_space<vmem>>, vector<24x48xbf16>
    %c0_4 = arith.constant 0 : index
    %c0_5 = arith.constant 0 : index
    %4 = vector.load %arg3[%c0_4, %c0_5] : memref<24x1xf32, #tpu.memory_space<vmem>>, vector<24x1xf32>
    %c16_i32 = arith.constant 16 : i32
    %5 = vector.broadcast %c16_i32 : i32 to vector<1x256xi32>
    %6 = arith.cmpi sge, %2, %5 : vector<1x256xi32>
    %c240_i32 = arith.constant 240 : i32
    %7 = vector.broadcast %c240_i32 : i32 to vector<1x256xi32>
    %8 = arith.cmpi slt, %2, %7 : vector<1x256xi32>
    %c16_i32_6 = arith.constant 16 : i32
    %9 = tpu.dynamic_rotate %1 by %c16_i32_6 dim 1 : vector<16x256xf32>, i32 -> vector<16x256xf32>
    %cst = arith.constant 0.000000e+00 : f32
    %10 = vector.shape_cast %6 : vector<1x256xi1> to vector<1x256xi1>
    %11 = vector.broadcast %10 : vector<1x256xi1> to vector<16x256xi1>
    %12 = vector.broadcast %cst : f32 to vector<16x256xf32>
    %13 = arith.select %11, %9, %12 : vector<16x256xi1>, vector<16x256xf32>
    %c240_i32_7 = arith.constant 240 : i32
    %14 = tpu.dynamic_rotate %1 by %c240_i32_7 dim 1 : vector<16x256xf32>, i32 -> vector<16x256xf32>
    %cst_8 = arith.constant 0.000000e+00 : f32
    %15 = vector.shape_cast %8 : vector<1x256xi1> to vector<1x256xi1>
    %16 = vector.broadcast %15 : vector<1x256xi1> to vector<16x256xi1>
    %17 = vector.broadcast %cst_8 : f32 to vector<16x256xf32>
    %18 = arith.select %16, %14, %17 : vector<16x256xi1>, vector<16x256xf32>
    %19 = tpu.concatenate %13, %1, %18 in 0 : vector<16x256xf32>, vector<16x256xf32>, vector<16x256xf32> -> vector<48x256xf32>
    %20 = arith.truncf %19 : vector<48x256xf32> to vector<48x256xbf16>
    %cst_9 = arith.constant dense<0.000000e+00> : vector<24x256xf32>
    %21 = tpu.matmul %3, %20, %cst_9 {dimension_numbers = #tpu.dot_dimension_numbers<[1], [0], [0], [1], [0, 0, 1, 1], [], []>} : vector<24x48xbf16>, vector<48x256xbf16>, vector<24x256xf32> -> vector<24x256xf32>
    %22 = vector.broadcast %4 : vector<24x1xf32> to vector<24x256xf32>
    %23 = arith.addf %21, %22 : vector<24x256xf32>
    %cst_10 = arith.constant 0.000000e+00 : f32
    %24 = vector.broadcast %cst_10 : f32 to vector<24x256xf32>
    %25 = arith.maximumf %23, %24 : vector<24x256xf32>
    %c16_i32_11 = arith.constant 16 : i32
    %c0_i32 = arith.constant 0 : i32
    %26 = arith.cmpi eq, %c16_i32_11, %c0_i32 : i32
    %c1_i32 = arith.constant 1 : i32
    %27 = arith.select %26, %c1_i32, %c16_i32_11 : i32
    %28 = vector.broadcast %27 : i32 to vector<1x256xi32>
    %29 = arith.remsi %2, %28 : vector<1x256xi32>
    %c0_i32_12 = arith.constant 0 : i32
    %30 = vector.broadcast %c0_i32_12 : i32 to vector<1x256xi32>
    %31 = arith.cmpi ne, %29, %30 : vector<1x256xi32>
    %c0_i32_13 = arith.constant 0 : i32
    %32 = vector.broadcast %c0_i32_13 : i32 to vector<1x256xi32>
    %33 = arith.cmpi slt, %29, %32 : vector<1x256xi32>
    %c0_i32_14 = arith.constant 0 : i32
    %34 = arith.cmpi slt, %27, %c0_i32_14 : i32
    %35 = vector.broadcast %34 : i1 to vector<1x256xi1>
    %36 = vector.broadcast %35 : vector<1x256xi1> to vector<1x256xi1>
    %37 = arith.xori %33, %36 : vector<1x256xi1>
    %38 = arith.andi %37, %31 : vector<1x256xi1>
    %39 = vector.broadcast %27 : i32 to vector<1x256xi32>
    %40 = arith.addi %29, %39 : vector<1x256xi32>
    %41 = arith.select %38, %40, %29 : vector<1x256xi1>, vector<1x256xi32>
    %c0_15 = arith.constant 0 : index
    %c0_16 = arith.constant 0 : index
    %42 = vector.load %arg4[%c0_15, %c0_16] : memref<32x72xbf16, #tpu.memory_space<vmem>>, vector<32x72xbf16>
    %c0_17 = arith.constant 0 : index
    %c0_18 = arith.constant 0 : index
    %43 = vector.load %arg5[%c0_17, %c0_18] : memref<32x1xf32, #tpu.memory_space<vmem>>, vector<32x1xf32>
    %c1_i32_19 = arith.constant 1 : i32
    %44 = vector.broadcast %c1_i32_19 : i32 to vector<1x256xi32>
    %45 = arith.cmpi sge, %41, %44 : vector<1x256xi32>
    %c15_i32 = arith.constant 15 : i32
    %46 = vector.broadcast %c15_i32 : i32 to vector<1x256xi32>
    %47 = arith.cmpi slt, %41, %46 : vector<1x256xi32>
    %c1_i32_20 = arith.constant 1 : i32
    %48 = tpu.dynamic_rotate %25 by %c1_i32_20 dim 1 : vector<24x256xf32>, i32 -> vector<24x256xf32>
    %cst_21 = arith.constant 0.000000e+00 : f32
    %49 = vector.shape_cast %45 : vector<1x256xi1> to vector<1x256xi1>
    %50 = vector.broadcast %49 : vector<1x256xi1> to vector<24x256xi1>
    %51 = vector.broadcast %cst_21 : f32 to vector<24x256xf32>
    %52 = arith.select %50, %48, %51 : vector<24x256xi1>, vector<24x256xf32>
    %c255_i32 = arith.constant 255 : i32
    %53 = tpu.dynamic_rotate %25 by %c255_i32 dim 1 : vector<24x256xf32>, i32 -> vector<24x256xf32>
    %cst_22 = arith.constant 0.000000e+00 : f32
    %54 = vector.shape_cast %47 : vector<1x256xi1> to vector<1x256xi1>
    %55 = vector.broadcast %54 : vector<1x256xi1> to vector<24x256xi1>
    %56 = vector.broadcast %cst_22 : f32 to vector<24x256xf32>
    %57 = arith.select %55, %53, %56 : vector<24x256xi1>, vector<24x256xf32>
    %58 = tpu.concatenate %52, %25, %57 in 0 : vector<24x256xf32>, vector<24x256xf32>, vector<24x256xf32> -> vector<72x256xf32>
    %59 = arith.truncf %58 : vector<72x256xf32> to vector<72x256xbf16>
    %cst_23 = arith.constant dense<0.000000e+00> : vector<32x256xf32>
    %60 = tpu.matmul %42, %59, %cst_23 {dimension_numbers = #tpu.dot_dimension_numbers<[1], [0], [0], [1], [0, 0, 1, 1], [], []>} : vector<32x72xbf16>, vector<72x256xbf16>, vector<32x256xf32> -> vector<32x256xf32>
    %61 = vector.broadcast %43 : vector<32x1xf32> to vector<32x256xf32>
    %62 = arith.addf %60, %61 : vector<32x256xf32>
    %63 = arith.truncf %62 : vector<32x256xf32> to vector<32x256xbf16>
    %c0_24 = arith.constant 0 : index
    %c0_25 = arith.constant 0 : index
    %c0_26 = arith.constant 0 : index
    %64 = vector.load %arg6[%c0_24, %c0_25, %c0_26] : memref<1x32x256xbf16, #tpu.memory_space<vmem>>, vector<1x32x256xbf16>
    %65 = vector.shape_cast %64 : vector<1x32x256xbf16> to vector<32x256xbf16>
    %66 = vector.shape_cast %63 : vector<32x256xbf16> to vector<1x32x256xbf16>
    tpu.vector_store %arg6[%c0_24, %c0_25, %c0_26], %66 {strides = array<i32>} : memref<1x32x256xbf16, #tpu.memory_space<vmem>>, vector<1x32x256xbf16>,
    %cst_27 = arith.constant dense<0.000000e+00> : vector<32xf32>
    %67 = vector.multi_reduction <add>, %62, %cst_27 [1] : vector<32x256xf32> to vector<32xf32>
    %68 = vector.shape_cast %67 : vector<32xf32> to vector<32x1xf32>
    %c0_28 = arith.constant 0 : index
    %c0_29 = arith.constant 0 : index
    %c0_30 = arith.constant 0 : index
    %69 = vector.load %arg7[%c0_28, %c0_29, %c0_30] : memref<1x32x1xf32, #tpu.memory_space<vmem>>, vector<1x32x1xf32>
    %70 = vector.shape_cast %69 : vector<1x32x1xf32> to vector<32x1xf32>
    %71 = vector.shape_cast %68 : vector<32x1xf32> to vector<1x32x1xf32>
    tpu.vector_store %arg7[%c0_28, %c0_29, %c0_30], %71 {strides = array<i32>} : memref<1x32x1xf32, #tpu.memory_space<vmem>>, vector<1x32x1xf32>,
    %72 = arith.mulf %62, %62 : vector<32x256xf32>
    %cst_31 = arith.constant dense<0.000000e+00> : vector<32xf32>
    %73 = vector.multi_reduction <add>, %72, %cst_31 [1] : vector<32x256xf32> to vector<32xf32>
    %74 = vector.shape_cast %73 : vector<32xf32> to vector<32x1xf32>
    %c0_32 = arith.constant 0 : index
    %c0_33 = arith.constant 0 : index
    %c0_34 = arith.constant 0 : index
    %75 = vector.load %arg8[%c0_32, %c0_33, %c0_34] : memref<1x32x1xf32, #tpu.memory_space<vmem>>, vector<1x32x1xf32>
    %76 = vector.shape_cast %75 : vector<1x32x1xf32> to vector<32x1xf32>
    %77 = vector.shape_cast %74 : vector<32x1xf32> to vector<1x32x1xf32>
    tpu.vector_store %arg8[%c0_32, %c0_33, %c0_34], %77 {strides = array<i32>} : memref<1x32x1xf32, #tpu.memory_space<vmem>>, vector<1x32x1xf32>,
    return
  }
  func.func @transform_0(%arg0: i32) -> (i32, i32, i32) {
    %c0_i32 = arith.constant 0 : i32
    %c0_i32_0 = arith.constant 0 : i32
    %c0_i32_1 = arith.constant 0 : i32
    return %arg0, %c0_i32, %c0_i32_0 : i32, i32, i32
  }
  func.func @transform_1(%arg0: i32) -> (i32, i32) {
    %c0_i32 = arith.constant 0 : i32
    %c0_i32_0 = arith.constant 0 : i32
    %c0_i32_1 = arith.constant 0 : i32
    return %c0_i32, %c0_i32_0 : i32, i32
  }
  func.func @transform_2(%arg0: i32) -> (i32, i32) {
    %c0_i32 = arith.constant 0 : i32
    %c0_i32_0 = arith.constant 0 : i32
    %c0_i32_1 = arith.constant 0 : i32
    return %c0_i32, %c0_i32_0 : i32, i32
  }
  func.func @transform_3(%arg0: i32) -> (i32, i32) {
    %c0_i32 = arith.constant 0 : i32
    %c0_i32_0 = arith.constant 0 : i32
    %c0_i32_1 = arith.constant 0 : i32
    return %c0_i32, %c0_i32_0 : i32, i32
  }
  func.func @transform_4(%arg0: i32) -> (i32, i32) {
    %c0_i32 = arith.constant 0 : i32
    %c0_i32_0 = arith.constant 0 : i32
    %c0_i32_1 = arith.constant 0 : i32
    return %c0_i32, %c0_i32_0 : i32, i32
  }
  func.func @transform_5(%arg0: i32) -> (i32, i32, i32) {
    %c0_i32 = arith.constant 0 : i32
    %c0_i32_0 = arith.constant 0 : i32
    %c0_i32_1 = arith.constant 0 : i32
    return %arg0, %c0_i32, %c0_i32_0 : i32, i32, i32
  }
  func.func @transform_6(%arg0: i32) -> (i32, i32, i32) {
    %c0_i32 = arith.constant 0 : i32
    %c0_i32_0 = arith.constant 0 : i32
    %c0_i32_1 = arith.constant 0 : i32
    return %arg0, %c0_i32, %c0_i32_0 : i32, i32, i32
  }
  func.func @transform_7(%arg0: i32) -> (i32, i32, i32) {
    %c0_i32 = arith.constant 0 : i32
    %c0_i32_0 = arith.constant 0 : i32
    %c0_i32_1 = arith.constant 0 : i32
    return %arg0, %c0_i32, %c0_i32_0 : i32, i32, i32
  }
}

module attributes {stable_mosaic.version = 11 : i64} {
  func.func @_stage2_kernel(%arg0: i32, %arg1: memref<1x32x256xbf16, #tpu.memory_space<vmem>>, %arg2: memref<2x32x1xf32, #tpu.memory_space<vmem>>, %arg3: memref<2x32x1xf32, #tpu.memory_space<vmem>>, %arg4: memref<32x1xf32, #tpu.memory_space<vmem>>, %arg5: memref<32x1xf32, #tpu.memory_space<vmem>>, %arg6: memref<24x96xbf16, #tpu.memory_space<vmem>>, %arg7: memref<24x1xf32, #tpu.memory_space<vmem>>, %arg8: memref<16x72xbf16, #tpu.memory_space<vmem>>, %arg9: memref<16x1xf32, #tpu.memory_space<vmem>>, %arg10: memref<1x16x256xbf16, #tpu.memory_space<vmem>>, %arg11: memref<1x16x1xf32, #tpu.memory_space<vmem>>, %arg12: memref<1x16x1xf32, #tpu.memory_space<vmem>>) attributes {dimension_semantics = [#tpu.dimension_semantics<parallel>], iteration_bounds = array<i64: 2>, scalar_prefetch = 0 : i64, scratch_operands = 0 : i64, tpu.core_type = #tpu.core_type<tc>, window_params = [{transform_indices = @transform_0, window_bounds = array<i64: 1, 32, 256>}, {pipeline_mode = #tpu.pipeline_mode<synchronous>, transform_indices = @transform_1, window_bounds = array<i64: 2, 32, 1>}, {pipeline_mode = #tpu.pipeline_mode<synchronous>, transform_indices = @transform_2, window_bounds = array<i64: 2, 32, 1>}, {pipeline_mode = #tpu.pipeline_mode<synchronous>, transform_indices = @transform_3, window_bounds = array<i64: 32, 1>}, {pipeline_mode = #tpu.pipeline_mode<synchronous>, transform_indices = @transform_4, window_bounds = array<i64: 32, 1>}, {pipeline_mode = #tpu.pipeline_mode<synchronous>, transform_indices = @transform_5, window_bounds = array<i64: 24, 96>}, {pipeline_mode = #tpu.pipeline_mode<synchronous>, transform_indices = @transform_6, window_bounds = array<i64: 24, 1>}, {pipeline_mode = #tpu.pipeline_mode<synchronous>, transform_indices = @transform_7, window_bounds = array<i64: 16, 72>}, {pipeline_mode = #tpu.pipeline_mode<synchronous>, transform_indices = @transform_8, window_bounds = array<i64: 16, 1>}, {transform_indices = @transform_9, window_bounds = array<i64: 1, 16, 256>}, {transform_indices = @transform_10, window_bounds = array<i64: 1, 16, 1>}, {transform_indices = @transform_11, window_bounds = array<i64: 1, 16, 1>}]} {
    %c0 = arith.constant 0 : index
    %c0_0 = arith.constant 0 : index
    %c0_1 = arith.constant 0 : index
    %0 = vector.load %arg2[%c0, %c0_0, %c0_1] : memref<2x32x1xf32, #tpu.memory_space<vmem>>, vector<2x32x1xf32>
    %cst = arith.constant dense<0.000000e+00> : vector<32x1xf32>
    %1 = vector.multi_reduction <add>, %0, %cst [0] : vector<2x32x1xf32> to vector<32x1xf32>
    %c0_2 = arith.constant 0 : index
    %c0_3 = arith.constant 0 : index
    %c0_4 = arith.constant 0 : index
    %2 = vector.load %arg3[%c0_2, %c0_3, %c0_4] : memref<2x32x1xf32, #tpu.memory_space<vmem>>, vector<2x32x1xf32>
    %cst_5 = arith.constant dense<0.000000e+00> : vector<32x1xf32>
    %3 = vector.multi_reduction <add>, %2, %cst_5 [0] : vector<2x32x1xf32> to vector<32x1xf32>
    %cst_6 = arith.constant 0.001953125 : f32
    %4 = vector.broadcast %cst_6 : f32 to vector<32x1xf32>
    %5 = arith.mulf %1, %4 : vector<32x1xf32>
    %cst_7 = arith.constant 0.001953125 : f32
    %6 = vector.broadcast %cst_7 : f32 to vector<32x1xf32>
    %7 = arith.mulf %3, %6 : vector<32x1xf32>
    %8 = arith.mulf %5, %5 : vector<32x1xf32>
    %9 = arith.subf %7, %8 : vector<32x1xf32>
    %c0_8 = arith.constant 0 : index
    %c0_9 = arith.constant 0 : index
    %10 = vector.load %arg4[%c0_8, %c0_9] : memref<32x1xf32, #tpu.memory_space<vmem>>, vector<32x1xf32>
    %cst_10 = arith.constant 1.000000e-03 : f32
    %11 = vector.broadcast %cst_10 : f32 to vector<32x1xf32>
    %12 = arith.addf %9, %11 : vector<32x1xf32>
    %13 = math.rsqrt %12 : vector<32x1xf32>
    %14 = arith.mulf %10, %13 : vector<32x1xf32>
    %c0_11 = arith.constant 0 : index
    %c0_12 = arith.constant 0 : index
    %15 = vector.load %arg5[%c0_11, %c0_12] : memref<32x1xf32, #tpu.memory_space<vmem>>, vector<32x1xf32>
    %16 = arith.mulf %5, %14 : vector<32x1xf32>
    %17 = arith.subf %15, %16 : vector<32x1xf32>
    %c0_13 = arith.constant 0 : index
    %c0_14 = arith.constant 0 : index
    %c0_15 = arith.constant 0 : index
    %18 = vector.load %arg1[%c0_13, %c0_14, %c0_15] : memref<1x32x256xbf16, #tpu.memory_space<vmem>>, vector<1x32x256xbf16>
    %19 = vector.shape_cast %18 : vector<1x32x256xbf16> to vector<32x256xbf16>
    %20 = arith.extf %19 : vector<32x256xbf16> to vector<32x256xf32>
    %21 = vector.broadcast %14 : vector<32x1xf32> to vector<32x256xf32>
    %22 = arith.mulf %20, %21 : vector<32x256xf32>
    %23 = vector.broadcast %17 : vector<32x1xf32> to vector<32x256xf32>
    %24 = arith.addf %22, %23 : vector<32x256xf32>
    %cst_16 = arith.constant 0.000000e+00 : f32
    %25 = vector.broadcast %cst_16 : f32 to vector<32x256xf32>
    %26 = arith.maximumf %24, %25 : vector<32x256xf32>
    %27 = tpu.iota {dimensions = array<i32: 1>} : vector<1x256xi32>
    %c0_17 = arith.constant 0 : index
    %c0_18 = arith.constant 0 : index
    %28 = vector.load %arg6[%c0_17, %c0_18] : memref<24x96xbf16, #tpu.memory_space<vmem>>, vector<24x96xbf16>
    %c0_19 = arith.constant 0 : index
    %c0_20 = arith.constant 0 : index
    %29 = vector.load %arg7[%c0_19, %c0_20] : memref<24x1xf32, #tpu.memory_space<vmem>>, vector<24x1xf32>
    %c32_i32 = arith.constant 32 : i32
    %30 = vector.broadcast %c32_i32 : i32 to vector<1x256xi32>
    %31 = arith.cmpi sge, %27, %30 : vector<1x256xi32>
    %c224_i32 = arith.constant 224 : i32
    %32 = vector.broadcast %c224_i32 : i32 to vector<1x256xi32>
    %33 = arith.cmpi slt, %27, %32 : vector<1x256xi32>
    %c32_i32_21 = arith.constant 32 : i32
    %34 = tpu.dynamic_rotate %26 by %c32_i32_21 dim 1 : vector<32x256xf32>, i32 -> vector<32x256xf32>
    %cst_22 = arith.constant 0.000000e+00 : f32
    %35 = vector.shape_cast %31 : vector<1x256xi1> to vector<1x256xi1>
    %36 = vector.broadcast %35 : vector<1x256xi1> to vector<32x256xi1>
    %37 = vector.broadcast %cst_22 : f32 to vector<32x256xf32>
    %38 = arith.select %36, %34, %37 : vector<32x256xi1>, vector<32x256xf32>
    %c224_i32_23 = arith.constant 224 : i32
    %39 = tpu.dynamic_rotate %26 by %c224_i32_23 dim 1 : vector<32x256xf32>, i32 -> vector<32x256xf32>
    %cst_24 = arith.constant 0.000000e+00 : f32
    %40 = vector.shape_cast %33 : vector<1x256xi1> to vector<1x256xi1>
    %41 = vector.broadcast %40 : vector<1x256xi1> to vector<32x256xi1>
    %42 = vector.broadcast %cst_24 : f32 to vector<32x256xf32>
    %43 = arith.select %41, %39, %42 : vector<32x256xi1>, vector<32x256xf32>
    %44 = tpu.concatenate %38, %26, %43 in 0 : vector<32x256xf32>, vector<32x256xf32>, vector<32x256xf32> -> vector<96x256xf32>
    %45 = arith.truncf %44 : vector<96x256xf32> to vector<96x256xbf16>
    %cst_25 = arith.constant dense<0.000000e+00> : vector<24x256xf32>
    %46 = tpu.matmul %28, %45, %cst_25 {dimension_numbers = #tpu.dot_dimension_numbers<[1], [0], [0], [1], [0, 0, 1, 1], [], []>} : vector<24x96xbf16>, vector<96x256xbf16>, vector<24x256xf32> -> vector<24x256xf32>
    %47 = vector.broadcast %29 : vector<24x1xf32> to vector<24x256xf32>
    %48 = arith.addf %46, %47 : vector<24x256xf32>
    %cst_26 = arith.constant 0.000000e+00 : f32
    %49 = vector.broadcast %cst_26 : f32 to vector<24x256xf32>
    %50 = arith.maximumf %48, %49 : vector<24x256xf32>
    %c16_i32 = arith.constant 16 : i32
    %c0_i32 = arith.constant 0 : i32
    %51 = arith.cmpi eq, %c16_i32, %c0_i32 : i32
    %c1_i32 = arith.constant 1 : i32
    %52 = arith.select %51, %c1_i32, %c16_i32 : i32
    %53 = vector.broadcast %52 : i32 to vector<1x256xi32>
    %54 = arith.remsi %27, %53 : vector<1x256xi32>
    %c0_i32_27 = arith.constant 0 : i32
    %55 = vector.broadcast %c0_i32_27 : i32 to vector<1x256xi32>
    %56 = arith.cmpi ne, %54, %55 : vector<1x256xi32>
    %c0_i32_28 = arith.constant 0 : i32
    %57 = vector.broadcast %c0_i32_28 : i32 to vector<1x256xi32>
    %58 = arith.cmpi slt, %54, %57 : vector<1x256xi32>
    %c0_i32_29 = arith.constant 0 : i32
    %59 = arith.cmpi slt, %52, %c0_i32_29 : i32
    %60 = vector.broadcast %59 : i1 to vector<1x256xi1>
    %61 = vector.broadcast %60 : vector<1x256xi1> to vector<1x256xi1>
    %62 = arith.xori %58, %61 : vector<1x256xi1>
    %63 = arith.andi %62, %56 : vector<1x256xi1>
    %64 = vector.broadcast %52 : i32 to vector<1x256xi32>
    %65 = arith.addi %54, %64 : vector<1x256xi32>
    %66 = arith.select %63, %65, %54 : vector<1x256xi1>, vector<1x256xi32>
    %c0_30 = arith.constant 0 : index
    %c0_31 = arith.constant 0 : index
    %67 = vector.load %arg8[%c0_30, %c0_31] : memref<16x72xbf16, #tpu.memory_space<vmem>>, vector<16x72xbf16>
    %c0_32 = arith.constant 0 : index
    %c0_33 = arith.constant 0 : index
    %68 = vector.load %arg9[%c0_32, %c0_33] : memref<16x1xf32, #tpu.memory_space<vmem>>, vector<16x1xf32>
    %c2_i32 = arith.constant 2 : i32
    %69 = vector.broadcast %c2_i32 : i32 to vector<1x256xi32>
    %70 = arith.cmpi sge, %66, %69 : vector<1x256xi32>
    %c14_i32 = arith.constant 14 : i32
    %71 = vector.broadcast %c14_i32 : i32 to vector<1x256xi32>
    %72 = arith.cmpi slt, %66, %71 : vector<1x256xi32>
    %c2_i32_34 = arith.constant 2 : i32
    %73 = tpu.dynamic_rotate %50 by %c2_i32_34 dim 1 : vector<24x256xf32>, i32 -> vector<24x256xf32>
    %cst_35 = arith.constant 0.000000e+00 : f32
    %74 = vector.shape_cast %70 : vector<1x256xi1> to vector<1x256xi1>
    %75 = vector.broadcast %74 : vector<1x256xi1> to vector<24x256xi1>
    %76 = vector.broadcast %cst_35 : f32 to vector<24x256xf32>
    %77 = arith.select %75, %73, %76 : vector<24x256xi1>, vector<24x256xf32>
    %c254_i32 = arith.constant 254 : i32
    %78 = tpu.dynamic_rotate %50 by %c254_i32 dim 1 : vector<24x256xf32>, i32 -> vector<24x256xf32>
    %cst_36 = arith.constant 0.000000e+00 : f32
    %79 = vector.shape_cast %72 : vector<1x256xi1> to vector<1x256xi1>
    %80 = vector.broadcast %79 : vector<1x256xi1> to vector<24x256xi1>
    %81 = vector.broadcast %cst_36 : f32 to vector<24x256xf32>
    %82 = arith.select %80, %78, %81 : vector<24x256xi1>, vector<24x256xf32>
    %83 = tpu.concatenate %77, %50, %82 in 0 : vector<24x256xf32>, vector<24x256xf32>, vector<24x256xf32> -> vector<72x256xf32>
    %84 = arith.truncf %83 : vector<72x256xf32> to vector<72x256xbf16>
    %cst_37 = arith.constant dense<0.000000e+00> : vector<16x256xf32>
    %85 = tpu.matmul %67, %84, %cst_37 {dimension_numbers = #tpu.dot_dimension_numbers<[1], [0], [0], [1], [0, 0, 1, 1], [], []>} : vector<16x72xbf16>, vector<72x256xbf16>, vector<16x256xf32> -> vector<16x256xf32>
    %86 = vector.broadcast %68 : vector<16x1xf32> to vector<16x256xf32>
    %87 = arith.addf %85, %86 : vector<16x256xf32>
    %88 = arith.truncf %87 : vector<16x256xf32> to vector<16x256xbf16>
    %c0_38 = arith.constant 0 : index
    %c0_39 = arith.constant 0 : index
    %c0_40 = arith.constant 0 : index
    %89 = vector.load %arg10[%c0_38, %c0_39, %c0_40] : memref<1x16x256xbf16, #tpu.memory_space<vmem>>, vector<1x16x256xbf16>
    %90 = vector.shape_cast %89 : vector<1x16x256xbf16> to vector<16x256xbf16>
    %91 = vector.shape_cast %88 : vector<16x256xbf16> to vector<1x16x256xbf16>
    tpu.vector_store %arg10[%c0_38, %c0_39, %c0_40], %91 {strides = array<i32>} : memref<1x16x256xbf16, #tpu.memory_space<vmem>>, vector<1x16x256xbf16>,
    %cst_41 = arith.constant dense<0.000000e+00> : vector<16xf32>
    %92 = vector.multi_reduction <add>, %87, %cst_41 [1] : vector<16x256xf32> to vector<16xf32>
    %93 = vector.shape_cast %92 : vector<16xf32> to vector<16x1xf32>
    %c0_42 = arith.constant 0 : index
    %c0_43 = arith.constant 0 : index
    %c0_44 = arith.constant 0 : index
    %94 = vector.load %arg11[%c0_42, %c0_43, %c0_44] : memref<1x16x1xf32, #tpu.memory_space<vmem>>, vector<1x16x1xf32>
    %95 = vector.shape_cast %94 : vector<1x16x1xf32> to vector<16x1xf32>
    %96 = vector.shape_cast %93 : vector<16x1xf32> to vector<1x16x1xf32>
    tpu.vector_store %arg11[%c0_42, %c0_43, %c0_44], %96 {strides = array<i32>} : memref<1x16x1xf32, #tpu.memory_space<vmem>>, vector<1x16x1xf32>,
    %97 = arith.mulf %87, %87 : vector<16x256xf32>
    %cst_45 = arith.constant dense<0.000000e+00> : vector<16xf32>
    %98 = vector.multi_reduction <add>, %97, %cst_45 [1] : vector<16x256xf32> to vector<16xf32>
    %99 = vector.shape_cast %98 : vector<16xf32> to vector<16x1xf32>
    %c0_46 = arith.constant 0 : index
    %c0_47 = arith.constant 0 : index
    %c0_48 = arith.constant 0 : index
    %100 = vector.load %arg12[%c0_46, %c0_47, %c0_48] : memref<1x16x1xf32, #tpu.memory_space<vmem>>, vector<1x16x1xf32>
    %101 = vector.shape_cast %100 : vector<1x16x1xf32> to vector<16x1xf32>
    %102 = vector.shape_cast %99 : vector<16x1xf32> to vector<1x16x1xf32>
    tpu.vector_store %arg12[%c0_46, %c0_47, %c0_48], %102 {strides = array<i32>} : memref<1x16x1xf32, #tpu.memory_space<vmem>>, vector<1x16x1xf32>,
    return
  }
  func.func @transform_0(%arg0: i32) -> (i32, i32, i32) {
    %c0_i32 = arith.constant 0 : i32
    %c0_i32_0 = arith.constant 0 : i32
    %c0_i32_1 = arith.constant 0 : i32
    return %arg0, %c0_i32, %c0_i32_0 : i32, i32, i32
  }
  func.func @transform_1(%arg0: i32) -> (i32, i32, i32) {
    %c0_i32 = arith.constant 0 : i32
    %c0_i32_0 = arith.constant 0 : i32
    %c0_i32_1 = arith.constant 0 : i32
    %c0_i32_2 = arith.constant 0 : i32
    return %c0_i32, %c0_i32_0, %c0_i32_1 : i32, i32, i32
  }
  func.func @transform_2(%arg0: i32) -> (i32, i32, i32) {
    %c0_i32 = arith.constant 0 : i32
    %c0_i32_0 = arith.constant 0 : i32
    %c0_i32_1 = arith.constant 0 : i32
    %c0_i32_2 = arith.constant 0 : i32
    return %c0_i32, %c0_i32_0, %c0_i32_1 : i32, i32, i32
  }
  func.func @transform_3(%arg0: i32) -> (i32, i32) {
    %c0_i32 = arith.constant 0 : i32
    %c0_i32_0 = arith.constant 0 : i32
    %c0_i32_1 = arith.constant 0 : i32
    return %c0_i32, %c0_i32_0 : i32, i32
  }
  func.func @transform_4(%arg0: i32) -> (i32, i32) {
    %c0_i32 = arith.constant 0 : i32
    %c0_i32_0 = arith.constant 0 : i32
    %c0_i32_1 = arith.constant 0 : i32
    return %c0_i32, %c0_i32_0 : i32, i32
  }
  func.func @transform_5(%arg0: i32) -> (i32, i32) {
    %c0_i32 = arith.constant 0 : i32
    %c0_i32_0 = arith.constant 0 : i32
    %c0_i32_1 = arith.constant 0 : i32
    return %c0_i32, %c0_i32_0 : i32, i32
  }
  func.func @transform_6(%arg0: i32) -> (i32, i32) {
    %c0_i32 = arith.constant 0 : i32
    %c0_i32_0 = arith.constant 0 : i32
    %c0_i32_1 = arith.constant 0 : i32
    return %c0_i32, %c0_i32_0 : i32, i32
  }
  func.func @transform_7(%arg0: i32) -> (i32, i32) {
    %c0_i32 = arith.constant 0 : i32
    %c0_i32_0 = arith.constant 0 : i32
    %c0_i32_1 = arith.constant 0 : i32
    return %c0_i32, %c0_i32_0 : i32, i32
  }
  func.func @transform_8(%arg0: i32) -> (i32, i32) {
    %c0_i32 = arith.constant 0 : i32
    %c0_i32_0 = arith.constant 0 : i32
    %c0_i32_1 = arith.constant 0 : i32
    return %c0_i32, %c0_i32_0 : i32, i32
  }
  func.func @transform_9(%arg0: i32) -> (i32, i32, i32) {
    %c0_i32 = arith.constant 0 : i32
    %c0_i32_0 = arith.constant 0 : i32
    %c0_i32_1 = arith.constant 0 : i32
    return %arg0, %c0_i32, %c0_i32_0 : i32, i32, i32
  }
  func.func @transform_10(%arg0: i32) -> (i32, i32, i32) {
    %c0_i32 = arith.constant 0 : i32
    %c0_i32_0 = arith.constant 0 : i32
    %c0_i32_1 = arith.constant 0 : i32
    return %arg0, %c0_i32, %c0_i32_0 : i32, i32, i32
  }
  func.func @transform_11(%arg0: i32) -> (i32, i32, i32) {
    %c0_i32 = arith.constant 0 : i32
    %c0_i32_0 = arith.constant 0 : i32
    %c0_i32_1 = arith.constant 0 : i32
    return %arg0, %c0_i32, %c0_i32_0 : i32, i32, i32
  }
}

module attributes {stable_mosaic.version = 11 : i64} {
  func.func @_stage3_kernel(%arg0: i32, %arg1: memref<1x16x256xbf16, #tpu.memory_space<vmem>>, %arg2: memref<2x16x1xf32, #tpu.memory_space<vmem>>, %arg3: memref<2x16x1xf32, #tpu.memory_space<vmem>>, %arg4: memref<16x1xf32, #tpu.memory_space<vmem>>, %arg5: memref<16x1xf32, #tpu.memory_space<vmem>>, %arg6: memref<1x16x256xf32, #tpu.memory_space<vmem>>, %arg7: memref<1x16x256xf32, #tpu.memory_space<vmem>>) attributes {dimension_semantics = [#tpu.dimension_semantics<parallel>], iteration_bounds = array<i64: 2>, scalar_prefetch = 0 : i64, scratch_operands = 0 : i64, tpu.core_type = #tpu.core_type<tc>, window_params = [{transform_indices = @transform_0, window_bounds = array<i64: 1, 16, 256>}, {pipeline_mode = #tpu.pipeline_mode<synchronous>, transform_indices = @transform_1, window_bounds = array<i64: 2, 16, 1>}, {pipeline_mode = #tpu.pipeline_mode<synchronous>, transform_indices = @transform_2, window_bounds = array<i64: 2, 16, 1>}, {pipeline_mode = #tpu.pipeline_mode<synchronous>, transform_indices = @transform_3, window_bounds = array<i64: 16, 1>}, {pipeline_mode = #tpu.pipeline_mode<synchronous>, transform_indices = @transform_4, window_bounds = array<i64: 16, 1>}, {transform_indices = @transform_5, window_bounds = array<i64: 1, 16, 256>}, {transform_indices = @transform_6, window_bounds = array<i64: 1, 16, 256>}]} {
    %c0 = arith.constant 0 : index
    %c0_0 = arith.constant 0 : index
    %c0_1 = arith.constant 0 : index
    %0 = vector.load %arg2[%c0, %c0_0, %c0_1] : memref<2x16x1xf32, #tpu.memory_space<vmem>>, vector<2x16x1xf32>
    %cst = arith.constant dense<0.000000e+00> : vector<16x1xf32>
    %1 = vector.multi_reduction <add>, %0, %cst [0] : vector<2x16x1xf32> to vector<16x1xf32>
    %c0_2 = arith.constant 0 : index
    %c0_3 = arith.constant 0 : index
    %c0_4 = arith.constant 0 : index
    %2 = vector.load %arg3[%c0_2, %c0_3, %c0_4] : memref<2x16x1xf32, #tpu.memory_space<vmem>>, vector<2x16x1xf32>
    %cst_5 = arith.constant dense<0.000000e+00> : vector<16x1xf32>
    %3 = vector.multi_reduction <add>, %2, %cst_5 [0] : vector<2x16x1xf32> to vector<16x1xf32>
    %cst_6 = arith.constant 0.001953125 : f32
    %4 = vector.broadcast %cst_6 : f32 to vector<16x1xf32>
    %5 = arith.mulf %1, %4 : vector<16x1xf32>
    %cst_7 = arith.constant 0.001953125 : f32
    %6 = vector.broadcast %cst_7 : f32 to vector<16x1xf32>
    %7 = arith.mulf %3, %6 : vector<16x1xf32>
    %8 = arith.mulf %5, %5 : vector<16x1xf32>
    %9 = arith.subf %7, %8 : vector<16x1xf32>
    %c0_8 = arith.constant 0 : index
    %c0_9 = arith.constant 0 : index
    %10 = vector.load %arg4[%c0_8, %c0_9] : memref<16x1xf32, #tpu.memory_space<vmem>>, vector<16x1xf32>
    %cst_10 = arith.constant 1.000000e-03 : f32
    %11 = vector.broadcast %cst_10 : f32 to vector<16x1xf32>
    %12 = arith.addf %9, %11 : vector<16x1xf32>
    %13 = math.rsqrt %12 : vector<16x1xf32>
    %14 = arith.mulf %10, %13 : vector<16x1xf32>
    %c0_11 = arith.constant 0 : index
    %c0_12 = arith.constant 0 : index
    %15 = vector.load %arg5[%c0_11, %c0_12] : memref<16x1xf32, #tpu.memory_space<vmem>>, vector<16x1xf32>
    %16 = arith.mulf %5, %14 : vector<16x1xf32>
    %17 = arith.subf %15, %16 : vector<16x1xf32>
    %c0_13 = arith.constant 0 : index
    %c0_14 = arith.constant 0 : index
    %c0_15 = arith.constant 0 : index
    %18 = vector.load %arg1[%c0_13, %c0_14, %c0_15] : memref<1x16x256xbf16, #tpu.memory_space<vmem>>, vector<1x16x256xbf16>
    %19 = vector.shape_cast %18 : vector<1x16x256xbf16> to vector<16x256xbf16>
    %20 = arith.extf %19 : vector<16x256xbf16> to vector<16x256xf32>
    %21 = vector.broadcast %14 : vector<16x1xf32> to vector<16x256xf32>
    %22 = arith.mulf %20, %21 : vector<16x256xf32>
    %23 = vector.broadcast %17 : vector<16x1xf32> to vector<16x256xf32>
    %24 = arith.addf %22, %23 : vector<16x256xf32>
    %c0_16 = arith.constant 0 : index
    %c0_17 = arith.constant 0 : index
    %c0_18 = arith.constant 0 : index
    %25 = vector.load %arg6[%c0_16, %c0_17, %c0_18] : memref<1x16x256xf32, #tpu.memory_space<vmem>>, vector<1x16x256xf32>
    %26 = vector.shape_cast %25 : vector<1x16x256xf32> to vector<16x256xf32>
    %27 = arith.addf %24, %26 : vector<16x256xf32>
    %cst_19 = arith.constant 0.000000e+00 : f32
    %28 = vector.broadcast %cst_19 : f32 to vector<16x256xf32>
    %29 = arith.maximumf %27, %28 : vector<16x256xf32>
    %c0_20 = arith.constant 0 : index
    %c0_21 = arith.constant 0 : index
    %c0_22 = arith.constant 0 : index
    %30 = vector.load %arg7[%c0_20, %c0_21, %c0_22] : memref<1x16x256xf32, #tpu.memory_space<vmem>>, vector<1x16x256xf32>
    %31 = vector.shape_cast %30 : vector<1x16x256xf32> to vector<16x256xf32>
    %32 = vector.shape_cast %29 : vector<16x256xf32> to vector<1x16x256xf32>
    tpu.vector_store %arg7[%c0_20, %c0_21, %c0_22], %32 {strides = array<i32>} : memref<1x16x256xf32, #tpu.memory_space<vmem>>, vector<1x16x256xf32>,
    return
  }
  func.func @transform_0(%arg0: i32) -> (i32, i32, i32) {
    %c0_i32 = arith.constant 0 : i32
    %c0_i32_0 = arith.constant 0 : i32
    %c0_i32_1 = arith.constant 0 : i32
    return %arg0, %c0_i32, %c0_i32_0 : i32, i32, i32
  }
  func.func @transform_1(%arg0: i32) -> (i32, i32, i32) {
    %c0_i32 = arith.constant 0 : i32
    %c0_i32_0 = arith.constant 0 : i32
    %c0_i32_1 = arith.constant 0 : i32
    %c0_i32_2 = arith.constant 0 : i32
    return %c0_i32, %c0_i32_0, %c0_i32_1 : i32, i32, i32
  }
  func.func @transform_2(%arg0: i32) -> (i32, i32, i32) {
    %c0_i32 = arith.constant 0 : i32
    %c0_i32_0 = arith.constant 0 : i32
    %c0_i32_1 = arith.constant 0 : i32
    %c0_i32_2 = arith.constant 0 : i32
    return %c0_i32, %c0_i32_0, %c0_i32_1 : i32, i32, i32
  }
  func.func @transform_3(%arg0: i32) -> (i32, i32) {
    %c0_i32 = arith.constant 0 : i32
    %c0_i32_0 = arith.constant 0 : i32
    %c0_i32_1 = arith.constant 0 : i32
    return %c0_i32, %c0_i32_0 : i32, i32
  }
  func.func @transform_4(%arg0: i32) -> (i32, i32) {
    %c0_i32 = arith.constant 0 : i32
    %c0_i32_0 = arith.constant 0 : i32
    %c0_i32_1 = arith.constant 0 : i32
    return %c0_i32, %c0_i32_0 : i32, i32
  }
  func.func @transform_5(%arg0: i32) -> (i32, i32, i32) {
    %c0_i32 = arith.constant 0 : i32
    %c0_i32_0 = arith.constant 0 : i32
    %c0_i32_1 = arith.constant 0 : i32
    return %arg0, %c0_i32, %c0_i32_0 : i32, i32, i32
  }
  func.func @transform_6(%arg0: i32) -> (i32, i32, i32) {
    %c0_i32 = arith.constant 0 : i32
    %c0_i32_0 = arith.constant 0 : i32
    %c0_i32_1 = arith.constant 0 : i32
    return %arg0, %c0_i32, %c0_i32_0 : i32, i32, i32
  }
}

</mosaic_0001>

<bundles_post_ra>
// kernel: non_bottleneck_1d_fwd.5
= control target key start
LH: loop header
LB: loop body
LE: loop exit
PB: predicated region body
PF: predicated region fallthrough
CT: control target
= control target key end

     0   :  { %s507_s21 = smov 0   ;;  %s575_s0 = inlined_call_operand.vmem [shape: bf16[2,16,256], index: 0, kind: input, shape index: {}]   ;;  %s576_s1 = inlined_call_operand.vmem [shape: f32[2,16,1], index: 1, kind: input, shape index: {}]   ;;  %s577_s2 = inlined_call_operand.vmem [shape: f32[2,16,1], index: 2, kind: input, shape index: {}]   ;;  %s578_s3 = inlined_call_operand.vmem [shape: f32[16,1], index: 3, kind: input, shape index: {}]   ;;  %s579_s4 = inlined_call_operand.vmem [shape: f32[16,1], index: 4, kind: input, shape index: {}]   ;;  %s580_s5 = inlined_call_operand.vmem [shape: f32[2,16,256], index: 5, kind: input, shape index: {}]   ;;  %s581_s6 = inlined_call_operand.vmem [shape: f32[2,16,256], index: 6, kind: output, shape index: {}]  }
   0x1 LB: > { %s432_s22 = sadd.s32 4294967295, %s469_s21   ;;  %p436_p0 = scmp.ge.s32.totalorder %s469_s21, 1  ;;  %s469_s21 = sphi %s507_s21, %s16_s21  }
   0x2   : > { %p222_p1 = scmp.lt.s32.totalorder %s469_s21, 3 }
   0x4   : > { %p223_p2 = pnand %p436_p0, %p222_p1 }
   0x5   : > { %v272_v0 = vld [vmem:[%s576_s1] sm:$0xff] (!%p223_p2)  ;;  %v274_v1 = vld [vmem:[%s576_s1 + $0x10] sm:$0xff] (!%p223_p2)  ;;  %vm276_vm0 = vcmask (!%p223_p2), 7168   ;;  %v471_v3 = vmov (!%p223_p2), 0   ;;  %v273_v8 = vld [vmem:[%s576_s1 + $0x8] sm:$0xff] (!%p223_p2)  ;;  %p257_p3 = scmp.lt.s32.totalorder (!%p223_p2), %s432_s22, 1 }
   0x6   : > { %226 = sbr.rel (%p223_p2) target bundleno = 173 (0xad), region = 44  ;;  %v283_v2 = vld [vmem:[%s577_s2] sm:$0xff] (!%p223_p2)  ;;  %457 = vset.pattern.permute.xlu0 (!%p223_p2), %v471_v3  ;;  %v277_v4 = vsel (!%p223_p2), %vm276_vm0, %v272_v0, 0.0  ;;  %v278_v5 = vsel (!%p223_p2), %vm276_vm0, %v274_v1, 0.0  ;;  %v285_v6 = vld [vmem:[%s577_s2 + $0x10] sm:$0xff] (!%p223_p2)  ;;  %458 = vset.pattern.permute.xlu1 (!%p223_p2), %v471_v3  ;;  %v275_v11 = vld [vmem:[%s576_s1 + $0x18] sm:$0xff] (!%p223_p2) }
   0x7   : > { %v287_v7 = vsel (!%p223_p2), %vm276_vm0, %v283_v2, 0.0  ;;  %v279_v9 = vadd.f32 (!%p223_p2), %v278_v5, %v277_v4  ;;  %v288_v10 = vsel (!%p223_p2), %vm276_vm0, %v285_v6, 0.0  ;;  %v280_v12 = vsel (!%p223_p2), %vm276_vm0, %v273_v8, 0.0  ;;  %v284_v13 = vld [vmem:[%s577_s2 + $0x8] sm:$0xff] (!%p223_p2)  ;;  %v286_v14 = vld [vmem:[%s577_s2 + $0x18] sm:$0xff] (!%p223_p2)  ;;  %v301_v31 = vld [vmem:[%s578_s3] sm:$0xff] (!%p223_p2) }
   0x8   : > { %v289_v15 = vadd.f32 (!%p223_p2), %v288_v10, %v287_v7  ;;  %v281_v16 = vsel (!%p223_p2), %vm276_vm0, %v275_v11, 0.0  ;;  %v290_v17 = vsel (!%p223_p2), %vm276_vm0, %v284_v13, 0.0  ;;  %v291_v18 = vsel (!%p223_p2), %vm276_vm0, %v286_v14, 0.0  ;;  %v302_v33 = vld [vmem:[%s578_s3 + $0x8] sm:$0xff] (!%p223_p2)  ;;  %v309_v36 = vld [vmem:[%s579_s4] sm:$0xff] (!%p223_p2) }
   0x9   : > { %v293_v19 = vmul.f32 (!%p223_p2), 0.001953125, %v279_v9  ;;  %v282_v20 = vadd.f32 (!%p223_p2), %v281_v16, %v280_v12  ;;  %v292_v21 = vadd.f32 (!%p223_p2), %v291_v18, %v290_v17  ;;  %v310_v39 = vld [vmem:[%s579_s4 + $0x8] sm:$0xff] (!%p223_p2) }
   0xa   : > { %v295_v22 = vmul.f32 (!%p223_p2), 0.001953125, %v289_v15 }
   0xb   : > { %v297_v23 = vmul.f32 (!%p223_p2), %v293_v19, %v293_v19  ;;  %v294_v24 = vmul.f32 (!%p223_p2), 0.001953125, %v282_v20  ;;  %v296_v25 = vmul.f32 (!%p223_p2), 0.001953125, %v292_v21 }
   0xd   : > { %v299_v26 = vsub.f32 %v295_v22, %v297_v23  ;;  %v298_v27 = vmul.f32 %v294_v24, %v294_v24  ;;  %s583_s22 = smov (!%p257_p3, %s432_s22), 1 }
   0xe   : > { %s445_s25 = sshll.u32 %s583_s22, 4  ;;  %s446_s29 = sshll.u32 %s583_s22, 5 }
   0xf   : > { %v303_v28 = vadd.f32 0.001, %v299_v26  ;;  %v300_v29 = vsub.f32 %v296_v25, %v298_v27  ;;  %s261_s28 = scalar_lea.vmem %s575_s0, %s445_s25  ;;  %s266_s8 = scalar_lea.vmem %s580_s5, %s446_s29 }
  0x10   : > { %v315_v43 = vld [vmem:[%s261_s28] sm:$0xff]  ;;  %v316_v47 = vld [vmem:[%s261_s28 + $0x8] sm:$0xff]  ;;  %s271_s10 = scalar_lea.vmem %s581_s6, %s446_s29  ;;  %v351_v63 = vld [vmem:[%s266_s8 + $0x10] sm:$0xff] }
  0x11   : > { %459 = vrsqrt.f32 %v303_v28  ;;  %v304_v30 = vadd.f32 0.001, %v300_v29  ;;  %v317_v44 = vunpack.c.l.bf16 %v315_v43  ;;  %v318_v45 = vunpack.c.h.bf16 %v315_v43  ;;  %v349_v54 = vld [vmem:[%s266_s8] sm:$0xff]  ;;  %v350_v55 = vld [vmem:[%s266_s8 + $0x8] sm:$0xff]  ;;  %v352_v0 = vld [vmem:[%s266_s8 + $0x18] sm:$0xff] }
  0x12   : > { %v319_v50 = vunpack.c.l.bf16 %v316_v47  ;;  %v320_v51 = vunpack.c.h.bf16 %v316_v47 }
  0x13   : > { %461 = vrsqrt.f32 %v304_v30 }
  0x1b   : > { %v460_v32 = vpop.eup %459 }
  0x1c   : > { %v307_v34 = vmul.f32 %v460_v32, %v301_v31 }
  0x1d   : > { %v462_v35 = vpop.eup %461 }
  0x1e   : > { %323 = vperm.xlu0 %457, %v307_v34   ;;  %v308_v37 = vmul.f32 %v462_v35, %v302_v33  ;;  %v311_v38 = vmul.f32 %v307_v34, %v293_v19 }
  0x20   : > { %v313_v40 = vsub.f32 %v309_v36, %v311_v38  ;;  %v312_v41 = vmul.f32 %v308_v37, %v294_v24 }
  0x22   : > { %328 = vperm.xlu0 %457, %v308_v37   ;;  %337 = vperm.xlu1 %458, %v313_v40   ;;  %v314_v42 = vsub.f32 %v310_v39, %v312_v41 }
  0x26   : > { %342 = vperm.xlu1 %458, %v314_v42  }
  0x9d   : > { %v324_v46 = vpop.permute.xlu0 %323 }
  0x9e   : > { %v331_v48 = vmul.f32 %v324_v46, %v317_v44  ;;  %v332_v49 = vmul.f32 %v324_v46, %v318_v45 }
  0xa1   : > { %v329_v52 = vpop.permute.xlu0 %328  ;;  %v338_v53 = vpop.permute.xlu1 %337 }
  0xa2   : > { %v345_v56 = vadd.f32 %v338_v53, %v331_v48  ;;  %v346_v57 = vadd.f32 %v338_v53, %v332_v49  ;;  %v333_v58 = vmul.f32 %v329_v52, %v319_v50  ;;  %v334_v59 = vmul.f32 %v329_v52, %v320_v51 }
  0xa4   : > { %v353_v60 = vadd.f32 %v349_v54, %v345_v56  ;;  %v354_v61 = vadd.f32 %v350_v55, %v346_v57 }
  0xa5   : > { %v343_v62 = vpop.permute.xlu1 %342 }
  0xa6   : > { %v357_v1 = vmax.f32 %v353_v60, 0.0  ;;  %v358_v2 = vmax.f32 %v354_v61, 0.0  ;;  %v347_v3 = vadd.f32 %v343_v62, %v333_v58  ;;  %v348_v4 = vadd.f32 %v343_v62, %v334_v59 }
  0xa8   : > { %361 = vst [vmem:[%s271_s10] sm:$0xff] %v357_v1  ;;  %362 = vst [vmem:[%s271_s10 + $0x8] sm:$0xff] %v358_v2  ;;  %v355_v5 = vadd.f32 %v351_v63, %v347_v3  ;;  %v356_v6 = vadd.f32 %v352_v0, %v348_v4 }
  0xaa   : > { %v359_v7 = vmax.f32 %v355_v5, 0.0  ;;  %v360_v8 = vmax.f32 %v356_v6, 0.0 }
  0xac   : > { %363 = vst [vmem:[%s271_s10 + $0x10] sm:$0xff] %v359_v7  ;;  %364 = vst [vmem:[%s271_s10 + $0x18] sm:$0xff] %v360_v8 }
  0xad PF: > { %s16_s21 = sadd.s32 1, %s469_s21  }
  0xae   : > { %p13_p4 = scmp.ge.s32.totalorder %s16_s21, 4  }
  0xb0   :  { %15 = sbr.rel (!%p13_p4) target bundleno = 1 (0x1), region = 77 }

// kernel: non_bottleneck_1d_fwd.3
= control target key start
LH: loop header
LB: loop body
LE: loop exit
PB: predicated region body
PF: predicated region fallthrough
CT: control target
= control target key end

     0   :  { %s1032_s24 = smov 0   ;;  %s1197_s0 = inlined_call_operand.vmem [shape: f32[2,16,256], index: 0, kind: input, shape index: {}]   ;;  %s1198_s1 = inlined_call_operand.vmem [shape: bf16[24,48], index: 1, kind: input, shape index: {}]   ;;  %s1199_s2 = inlined_call_operand.vmem [shape: f32[24,1], index: 2, kind: input, shape index: {}]   ;;  %s1200_s3 = inlined_call_operand.vmem [shape: bf16[32,72], index: 3, kind: input, shape index: {}]   ;;  %s1201_s4 = inlined_call_operand.vmem [shape: f32[32,1], index: 4, kind: input, shape index: {}]   ;;  %s1202_s5 = inlined_call_operand.vmem [shape: bf16[2,32,256], index: 5, kind: output, shape index: {0}]   ;;  %s1203_s6 = inlined_call_operand.vmem [shape: f32[2,32,1], index: 6, kind: output, shape index: {1}]   ;;  %s1204_s7 = inlined_call_operand.vmem [shape: f32[2,32,1], index: 7, kind: output, shape index: {2}]  }
   0x1 LB: > { %s848_s25 = sadd.s32 4294967295, %s984_s24   ;;  %p852_p0 = scmp.ge.s32.totalorder %s984_s24, 1  ;;  %s984_s24 = sphi %s1032_s24, %s18_s24  }
   0x2   : > { %p242_p1 = scmp.lt.s32.totalorder %s984_s24, 3 }
   0x4   : > { %p243_p2 = pnand %p852_p0, %p242_p1 }
   0x5   : > { %p284_p3 = scmp.lt.s32.totalorder (!%p243_p2), %s848_s25, 1  ;;  %s986_s30 = smov (!%p243_p2), 16   ;;  %v988_v8 = vmov (!%p243_p2), 0   ;;  %v315_v9 = vld [vmem:[%s1199_s2] sm:$0xff] (!%p243_p2)  ;;  %v316_v10 = vld [vmem:[%s1199_s2 + $0x8] sm:$0xff] (!%p243_p2)  ;;  %v317_v11 = vld [vmem:[%s1199_s2 + $0x10] sm:$0xff] (!%p243_p2)  ;;  %v309_v12 = vlaneseq (!%p243_p2) }
   0x6   : > { %246 = sbr.rel (%p243_p2) target bundleno = 894 (0x37e), region = 40  ;;  %s987_s8 = smov (!%p243_p2), 112   ;;  %432 = vmatprep.mubr.bf16.mxu0 (!%p243_p2), %v988_v8  ;;  %942 = vset.pattern.permute.xlu0 (!%p243_p2), %v988_v8  ;;  %v974_v39 = vld [vmem:[%s1198_s1] sm:$0xff] (!%p243_p2)   ;;  %vm393_vm6 = vcmask (!%p243_p2), 392192   ;;  %v975_v40 = vld [vmem:[%s1198_s1 + $0x8] ss:$0 sps:$4 sm:$0xff] (!%p243_p2)  }
   0x7   : > { %943 = vset.pattern.permute.xlu1 (!%p243_p2), %v988_v8  ;;  %637 = vmatprep.mubr.bf16.mxu1 (!%p243_p2), %v988_v8  ;;  %v1059_v15 = vand.u32 (!%p243_p2), 127, %v309_v12  ;;  %s989_s19 = smov (!%p243_p2), 1   ;;  %s990_s20 = smov (!%p243_p2), 127   ;;  %vm991_vm12 = vmmov (!%p243_p2), 1  }
   0x9   : > { %vm330_vm0 = vcmp.lt.s32.totalorder (!%p243_p2), %v1059_v15, 16  ;;  %vm318_vm1 = vcmp.ge.s32.totalorder (!%p243_p2), %v1059_v15, 16  ;;  %v1064_v24 = vadd.s32 (!%p243_p2), 128, %v1059_v15  ;;  %vm351_vm2 = vcmp.lt.s32.totalorder (!%p243_p2), %v1059_v15, 112 }
   0xa   : > { %vm863_vm3 = vmpackc.low (!%p243_p2), %vm318_vm1, %vm318_vm1  ;;  %vm505_vm7 = vcmp.lt.s32.totalorder (!%p243_p2), %v1059_v15, 1  ;;  %vm534_vm14 = vcmp.lt.s32.totalorder (!%p243_p2), %v1059_v15, 127 }
   0xb   : > { %vm321_vm4 = vcmp.lt.s32.totalorder (!%p243_p2), %v1064_v24, 240 }
   0xc   : > { %vm866_vm5 = vmpackc.low (!%p243_p2), %vm321_vm4, %vm321_vm4  ;;  %vm598_vm4 = vcmask (!%p243_p2), 1043456  }
   0xd   : > { %s1210_s25 = smov (!%p284_p3, %s848_s25), 1 }
   0xe   : > { %s1040_s26 = sshll.u32 %s1210_s25, 5 }
   0xf   : > { %s288_s29 = scalar_lea.vmem %s1197_s0, %s1040_s26  ;;  %s1172_s14 = scalar_lea.vmem %s1202_s5, %s1040_s26 }
  0x10   : > { %v305_v0 = vld [vmem:[%s288_s29] sm:$0xff]  ;;  %v307_v1 = vld [vmem:[%s288_s29 + $0x10] sm:$0xff]  ;;  %v306_v2 = vld [vmem:[%s288_s29 + $0x8] sm:$0xff]  ;;  %s298_s17 = scalar_lea.vmem %s1203_s6, %s1040_s26 }
  0x11   : > { %v922_v3 = vpack.i.bf16 %v307_v1, %v305_v0  ;;  %v308_v4 = vld [vmem:[%s288_s29 + $0x18] sm:$0xff]  ;;  %v366_v5 = vpack.c.bf16 %v307_v1, %v305_v0 }
  0x12   : > { %v367_v6 = vpack.c.bf16 %v308_v4, %v306_v2  ;;  %v927_v7 = vpack.i.bf16 %v308_v4, %v306_v2 }
  0x13   : > { %923 = vrot.lane.b32.xlu0 %v922_v3, %s986_s30  ;;  %933 = vrot.lane.b32.xlu1 %v922_v3, %s987_s8 }
  0x17   : > { %928 = vrot.lane.b32.xlu0 %v927_v7, %s986_s30  ;;  %938 = vrot.lane.b32.xlu1 %v927_v7, %s987_s8  ;;  %v488_v7 = vld [vmem:[%s1201_s4 + $0x18] sm:$0xff] }
  0x1b   : > { %372 = vperm.xlu0 %942, %v315_v9   ;;  %377 = vperm.xlu1 %943, %v316_v10   ;;  %v487_v9 = vld [vmem:[%s1201_s4 + $0x10] sm:$0xff]  ;;  %v468_v10 = vand.u32 15, %v1064_v24 }
  0x1d   : > { %vm1113_vm8 = vcmp.ge.s32.totalorder %v468_v10, 1 }
  0x1e   : > { %vm873_vm10 = vmpackc.low %vm1113_vm8, %vm1113_vm8 }
  0x1f   : > { %382 = vperm.xlu1 %943, %v317_v11   ;;  %v461_v11 = vand.u32 15, %v1059_v15  ;;  %vm879_vm13 = vmpackc.low %vm991_vm12, %vm1113_vm8  ;;  %v976_v15 = vld [vmem:[%s1200_s3] sm:$0xff]  }
  0x21   : > { %vm1117_vm9 = vcmp.ge.s32.totalorder %v461_v11, 1  ;;  %vm491_vm1 = vcmp.lt.s32.totalorder %v461_v11, 15 }
  0x22   : > { %vm876_vm11 = vmpackc.low %vm1117_vm9, %vm1117_vm9 }
  0x23   : > { %vm882_vm15 = vmpackc.low %vm991_vm12, %vm1117_vm9 }
  0x85   : > { %v924_v13 = vpop.permute.xlu0 %923  ;;  %v934_v14 = vpop.permute.xlu1 %933 }
  0x86   : > { %v926_v18 = vunpack.i.h.bf16 %v924_v13  ;;  %v925_v19 = vunpack.i.l.bf16 %v924_v13  ;;  %v936_v22 = vunpack.i.h.bf16 %v934_v14  ;;  %v935_v23 = vunpack.i.l.bf16 %v934_v14 }
  0x89   : > { %v929_v16 = vpop.permute.xlu0 %928  ;;  %v939_v17 = vpop.permute.xlu1 %938 }
  0x8a   : > { %v931_v20 = vunpack.i.h.bf16 %v929_v16  ;;  %v930_v21 = vunpack.i.l.bf16 %v929_v16  ;;  %v941_v25 = vunpack.i.h.bf16 %v939_v17  ;;  %v940_v26 = vunpack.i.l.bf16 %v939_v17 }
  0x8c   : > { %v331_v27 = vsel %vm330_vm0, %v925_v19, %v930_v21  ;;  %v332_v28 = vsel %vm330_vm0, %v926_v18, %v931_v20  ;;  %v333_v30 = vsel %vm330_vm0, %v930_v21, %v925_v19  ;;  %v334_v31 = vsel %vm330_vm0, %v931_v20, %v926_v18 }
  0x8d   : > { %v365_v29 = vpack.c.bf16 %v332_v28, %v331_v27  ;;  %v864_v32 = vpack.c.bf16 %v334_v31, %v333_v30  ;;  %v354_v33 = vsel %vm351_vm2, %v940_v26, %v935_v23  ;;  %v355_v34 = vsel %vm351_vm2, %v941_v25, %v936_v22 }
  0x8e   : > { %v867_v35 = vpack.c.bf16 %v355_v34, %v354_v33  ;;  %v352_v36 = vsel %vm351_vm2, %v935_v23, %v940_v26  ;;  %v353_v37 = vsel %vm351_vm2, %v936_v22, %v941_v25  ;;  %vm492_vm0 = vcmp.lt.s32.totalorder %v468_v10, 15 }
  0x8f   : > { %400 = vmatprep.subr.bf16.mxu0 %v365_v29  ;;  %v368_v38 = vpack.c.bf16 %v353_v37, %v352_v36  ;;  %vm885_vm2 = vmpackc.low %vm492_vm0, %vm492_vm0 }
  0x90   : > { %865 = vmatpush1.bf16.msk.msra.mxu0 %vm863_vm3, %v864_v32  ;;  %vm888_vm3 = vmpackc.low %vm491_vm1, %vm491_vm1 }
  0x91   : > { %402 = vmatprep.subr.bf16.mxu0 %v367_v6  ;;  %v485_v6 = vld [vmem:[%s1201_s4] sm:$0xff] }
  0x94   : > { %403 = vmatpush1.bf16.msra.mxu0 %v366_v5  ;;  %v486_v5 = vld [vmem:[%s1201_s4 + $0x8] sm:$0xff] }
  0x95   : > { %868 = vmatprep.subr.msk.bf16.mxu0 %vm866_vm5, %v867_v35  ;;  %vm591_vm5 = vcmask 588800  }
  0x98   : > { %405 = vmatpush1.bf16.msra.mxu0 %v368_v38 }
  0x9a   : > { %v373_v41 = vpop.permute.xlu0 %372  ;;  %v378_v43 = vpop.permute.xlu1 %377 }
  0x9b   : > { %869 = vmatmul.mubr.msk.bf16.vlgmr.msra.gmra.mrb[0].mxu0 %vm393_vm6, %v974_v39 }
  0x9c   : > { %442 = vmatprep.mubr.bf16.mxu0 %v988_v8 }
  0x9e   : > { %v383_v56 = vpop.permute.xlu1 %382 }
  0xa3   : > { %870 = vmatmul.mubr.msk.bf16.gmra.mrb[4].mxu0 %vm393_vm6, %v975_v40  ;;  %vm698_vm6 = vcmask 7168  }
 0x16e   : > { %v434_v42 = vpop.f32.mrb[0].mxu0 }
 0x16f   : > { %v1086_v44 = vadd.f32 %v434_v42, %v373_v41  ;;  %v436_v45 = vpop.f32.mrb[1].mxu0 }
 0x170   : > { %v1088_v46 = vadd.f32 %v436_v45, %v373_v41  ;;  %v438_v47 = vpop.f32.mrb[2].mxu0 }
 0x171   : > { %v439_v48 = vadd.f32 %v438_v47, %v378_v43  ;;  %v440_v49 = vpop.f32.mrb[3].mxu0  ;;  %v451_v51 = vmax.f32 %v1086_v44, 0.0 }
 0x172   : > { %v441_v50 = vadd.f32 %v440_v49, %v378_v43  ;;  %v452_v53 = vmax.f32 %v1088_v46, 0.0 }
 0x173   : > { %v453_v52 = vmax.f32 %v439_v48, 0.0 }
 0x174   : > { %v454_v54 = vmax.f32 %v441_v50, 0.0 }
 0x175   : > { %v944_v55 = vpack.i.bf16 %v453_v52, %v451_v51 }
 0x176   : > { %v444_v57 = vpop.f32.mrb[4].mxu0  ;;  %v949_v58 = vpack.i.bf16 %v454_v54, %v452_v53 }
 0x177   : > { %v445_v59 = vadd.f32 %v444_v57, %v383_v56  ;;  %v446_v60 = vpop.f32.mrb[5].mxu0  ;;  %945 = vrot.lane.b32.xlu0 %v944_v55, %s989_s19 }
 0x178   : > { %v447_v61 = vadd.f32 %v446_v60, %v383_v56  ;;  %v448_v62 = vpop.f32.mrb[6].mxu0  ;;  %950 = vrot.lane.b32.xlu1 %v949_v58, %s989_s19  ;;  %v977_v56 = vld [vmem:[%s1200_s3 + $0x8] sm:$0xff]  }
 0x179   : > { %v455_v63 = vmax.f32 %v445_v59, 0.0  ;;  %v449_v0 = vpop.f32.mrb[7].mxu0 }
 0x17a   : > { %v456_v1 = vmax.f32 %v447_v61, 0.0 }
 0x17b   : > { %v1096_v2 = vpack.c.bf16 %v455_v63, %v453_v52 }
 0x17c   : > { %960 = vrot.lane.b32.xlu1 %v944_v55, %s990_s20  ;;  %v954_v3 = vpack.i.bf16 %v456_v1, %v455_v63  ;;  %v556_v4 = vpack.c.bf16 %v456_v1, %v454_v54 }
 0x17e   : > { %955 = vrot.lane.b32.xlu0 %v954_v3, %s989_s19 }
 0x180   : > { %970 = vrot.lane.b32.xlu1 %v954_v3, %s990_s20 }
 0x182   : > { %965 = vrot.lane.b32.xlu0 %v949_v58, %s990_s20  ;;  %s303_s20 = scalar_lea.vmem %s1204_s7, %s1040_s26 }
 0x184   : > { %568 = vperm.xlu1 %943, %v486_v5  }
 0x186   : > { %563 = vperm.xlu0 %942, %v485_v6  }
 0x188   : > { %578 = vperm.xlu1 %943, %v488_v7  }
 0x18a   : > { %573 = vperm.xlu0 %942, %v487_v9  }
 0x1e9   : > { %v946_v12 = vpop.permute.xlu0 %945 }
 0x1ea   : > { %v948_v13 = vunpack.i.h.bf16 %v946_v12  ;;  %v947_v14 = vunpack.i.l.bf16 %v946_v12  ;;  %v951_v16 = vpop.permute.xlu1 %950 }
 0x1eb   : > { %v953_v18 = vunpack.i.h.bf16 %v951_v16  ;;  %v952_v19 = vunpack.i.l.bf16 %v951_v16 }
 0x1ed   : > { %v506_v21 = vsel %vm505_vm7, %v947_v14, %v952_v19  ;;  %v507_v22 = vsel %vm505_vm7, %v948_v13, %v953_v18  ;;  %v509_v23 = vsel %vm505_vm7, %v952_v19, %v947_v14  ;;  %v510_v24 = vsel %vm505_vm7, %v953_v18, %v948_v13 }
 0x1ee   : > { %v961_v25 = vpop.permute.xlu1 %960  ;;  %v874_v26 = vpack.c.bf16 %v507_v22, %v506_v21  ;;  %v877_v27 = vpack.c.bf16 %v510_v24, %v509_v23 }
 0x1ef   : > { %v963_v39 = vunpack.i.h.bf16 %v961_v25  ;;  %v962_v40 = vunpack.i.l.bf16 %v961_v25 }
 0x1f0   : > { %v956_v28 = vpop.permute.xlu0 %955  ;;  %875 = vmatprep.subr.msk.bf16.mxu1 %vm873_vm10, %v874_v26 }
 0x1f1   : > { %v958_v29 = vunpack.i.h.bf16 %v956_v28  ;;  %v957_v30 = vunpack.i.l.bf16 %v956_v28  ;;  %878 = vmatpush1.bf16.msk.msra.mxu1 %vm876_vm11, %v877_v27 }
 0x1f2   : > { %v971_v31 = vpop.permute.xlu1 %970 }
 0x1f3   : > { %v508_v32 = vsel %vm505_vm7, %v957_v30, %v958_v29  ;;  %v511_v33 = vsel %vm505_vm7, %v958_v29, %v957_v30  ;;  %v973_v36 = vunpack.i.h.bf16 %v971_v31  ;;  %v972_v37 = vunpack.i.l.bf16 %v971_v31 }
 0x1f4   : > { %v880_v34 = vpack.c.bf16 %v452_v53, %v508_v32  ;;  %v883_v35 = vpack.c.bf16 %v451_v51, %v511_v33  ;;  %v966_v38 = vpop.permute.xlu0 %965 }
 0x1f5   : > { %v968_v41 = vunpack.i.h.bf16 %v966_v38  ;;  %v967_v42 = vunpack.i.l.bf16 %v966_v38  ;;  %v540_v44 = vsel %vm534_vm14, %v973_v36, %v972_v37  ;;  %v537_v46 = vsel %vm534_vm14, %v972_v37, %v973_v36 }
 0x1f6   : > { %881 = vmatprep.subr.msk.bf16.mxu1 %vm879_vm13, %v880_v34  ;;  %v550_v50 = vsel %vm492_vm0, %v540_v44, 0.0  ;;  %v549_v51 = vsel %vm491_vm1, %v537_v46, 0.0 }
 0x1f7   : > { %v539_v43 = vsel %vm534_vm14, %v968_v41, %v963_v39  ;;  %v538_v45 = vsel %vm534_vm14, %v967_v42, %v962_v40  ;;  %884 = vmatpush1.bf16.msk.msra.mxu1 %vm882_vm15, %v883_v35  ;;  %v536_v47 = vsel %vm534_vm14, %v963_v39, %v968_v41  ;;  %v535_v48 = vsel %vm534_vm14, %v962_v40, %v967_v42 }
 0x1f8   : > { %609 = vmatprep.subr.bf16.mxu1 %v556_v4  ;;  %v886_v49 = vpack.c.bf16 %v539_v43, %v538_v45  ;;  %v889_v52 = vpack.c.bf16 %v536_v47, %v535_v48  ;;  %v560_v53 = vpack.c.bf16 %v550_v50, %v550_v50  ;;  %v559_v54 = vpack.c.bf16 %v549_v51, %v549_v51 }
 0x1fa   : > { %v600_v55 = vsel %vm598_vm4, %v559_v54, 0 }
 0x1fb   : > { %610 = vmatpush1.bf16.msra.mxu1 %v1096_v2 }
 0x1fc   : > { %887 = vmatprep.subr.msk.bf16.mxu1 %vm885_vm2, %v886_v49 }
 0x1ff   : > { %890 = vmatpush1.bf16.msk.msra.mxu1 %vm888_vm3, %v889_v52 }
 0x200   : > { %891 = vmatprep.subr.msk.bf16.mxu1 %vm598_vm4, %v560_v53 }
 0x203   : > { %614 = vmatpush1.bf16.msra.mxu1 %v600_v55  ;;  %v569_v61 = vpop.permute.xlu1 %568 }
 0x205   : > { %v564_v57 = vpop.permute.xlu0 %563 }
 0x206   : > { %892 = vmatmul.mubr.msk.bf16.vlgmr.msra.gmra.mrb[0].mxu1 %vm591_vm5, %v976_v15 }
 0x207   : > { %647 = vmatprep.mubr.bf16.mxu1 %v988_v8  ;;  %v579_v18 = vpop.permute.xlu1 %578 }
 0x209   : > { %v574_v12 = vpop.permute.xlu0 %573 }
 0x20e   : > { %893 = vmatmul.mubr.msk.bf16.gmra.mrb[4].mxu1 %vm591_vm5, %v977_v56 }
 0x2d9   : > { %v639_v58 = vpop.f32.mrb[0].mxu1 }
 0x2da   : > { %v640_v59 = vadd.f32 %v639_v58, %v564_v57  ;;  %v641_v60 = vpop.f32.mrb[1].mxu1 }
 0x2db   : > { %v642_v62 = vadd.f32 %v641_v60, %v564_v57  ;;  %v643_v63 = vpop.f32.mrb[2].mxu1 }
 0x2dc   : > { %v644_v8 = vadd.f32 %v643_v63, %v569_v61  ;;  %v645_v0 = vpop.f32.mrb[3].mxu1  ;;  %v703_v1 = vmul.f32 %v640_v59, %v640_v59 }
 0x2dd   : > { %v904_v2 = vpack.c.bf16 %v642_v62, %v640_v59  ;;  %v646_v3 = vadd.f32 %v645_v0, %v569_v61  ;;  %v686_v4 = vadd.f32 %v642_v62, %v640_v59  ;;  %v704_v5 = vmul.f32 %v642_v62, %v642_v62 }
 0x2de   : > { %v705_v6 = vmul.f32 %v644_v8, %v644_v8 }
 0x2df   : > { %682 = vst [vmem:[%s1172_s14] sm:$0xff] %v904_v2  ;;  %v905_v7 = vpack.c.bf16 %v646_v3, %v644_v8  ;;  %687 = vadd.xlane.f32.xlu0 %v686_v4  ;;  %v689_v9 = vadd.f32 %v646_v3, %v644_v8  ;;  %v706_v10 = vmul.f32 %v646_v3, %v646_v3 }
 0x2e0   : > { %v711_v11 = vadd.f32 %v704_v5, %v703_v1 }
 0x2e1   : > { %683 = vst [vmem:[%s1172_s14 + $0x8] sm:$0xff] %v905_v7  ;;  %v649_v13 = vpop.f32.mrb[4].mxu1  ;;  %690 = vadd.xlane.f32.xlu1 %v689_v9  ;;  %v714_v14 = vadd.f32 %v706_v10, %v705_v6 }
 0x2e2   : > { %v650_v16 = vadd.f32 %v649_v13, %v574_v12  ;;  %v651_v17 = vpop.f32.mrb[5].mxu1 }
 0x2e3   : > { %v652_v19 = vadd.f32 %v651_v17, %v574_v12  ;;  %v653_v20 = vpop.f32.mrb[6].mxu1  ;;  %715 = vadd.xlane.f32.xlu0 %v714_v14 }
 0x2e4   : > { %v654_v21 = vadd.f32 %v653_v20, %v579_v18  ;;  %v655_v22 = vpop.f32.mrb[7].mxu1  ;;  %v707_v23 = vmul.f32 %v650_v16, %v650_v16 }
 0x2e5   : > { %v906_v24 = vpack.c.bf16 %v652_v19, %v650_v16  ;;  %v656_v25 = vadd.f32 %v655_v22, %v579_v18  ;;  %712 = vadd.xlane.f32.xlu1 %v711_v11  ;;  %v692_v26 = vadd.f32 %v652_v19, %v650_v16  ;;  %v708_v27 = vmul.f32 %v652_v19, %v652_v19 }
 0x2e6   : > { %v709_v28 = vmul.f32 %v654_v21, %v654_v21 }
 0x2e7   : > { %684 = vst [vmem:[%s1172_s14 + $0x10] sm:$0xff] %v906_v24  ;;  %v907_v29 = vpack.c.bf16 %v656_v25, %v654_v21  ;;  %693 = vadd.xlane.f32.xlu0 %v692_v26  ;;  %v717_v30 = vadd.f32 %v708_v27, %v707_v23  ;;  %v695_v31 = vadd.f32 %v656_v25, %v654_v21 }
 0x2e8   : > { %v710_v32 = vmul.f32 %v656_v25, %v656_v25 }
 0x2e9   : > { %685 = vst [vmem:[%s1172_s14 + $0x18] sm:$0xff] %v907_v29  ;;  %718 = vadd.xlane.f32.xlu1 %v717_v30 }
 0x2ea   : > { %v720_v33 = vadd.f32 %v710_v32, %v709_v28 }
 0x2eb   : > { %696 = vadd.xlane.f32.xlu0 %v695_v31 }
 0x2ef   : > { %721 = vadd.xlane.f32.xlu0 %v720_v33 }
 0x36c   : > { %v688_v34 = vpop.xlane.xlu0 %687 }
 0x36d   : > { %699 = vst.msk [vmem:[%s298_s17] sm:$0xff] %vm698_vm6, %v688_v34 }
 0x36e   : > { %v691_v35 = vpop.xlane.xlu1 %690 }
 0x36f   : > { %700 = vst.msk [vmem:[%s298_s17 + $0x8] sm:$0xff] %vm698_vm6, %v691_v35 }
 0x370   : > { %v716_v36 = vpop.xlane.xlu0 %715 }
 0x371   : > { %724 = vst.msk [vmem:[%s303_s20 + $0x8] sm:$0xff] %vm698_vm6, %v716_v36 }
 0x372   : > { %v713_v37 = vpop.xlane.xlu1 %712 }
 0x373   : > { %723 = vst.msk [vmem:[%s303_s20] sm:$0xff] %vm698_vm6, %v713_v37 }
 0x374   : > { %v694_v38 = vpop.xlane.xlu0 %693 }
 0x375   : > { %701 = vst.msk [vmem:[%s298_s17 + $0x10] sm:$0xff] %vm698_vm6, %v694_v38 }
 0x376   : > { %v719_v39 = vpop.xlane.xlu1 %718 }
 0x377   : > { %725 = vst.msk [vmem:[%s303_s20 + $0x10] sm:$0xff] %vm698_vm6, %v719_v39 }
 0x378   : > { %v697_v40 = vpop.xlane.xlu0 %696 }
 0x379   : > { %702 = vst.msk [vmem:[%s298_s17 + $0x18] sm:$0xff] %vm698_vm6, %v697_v40 }
 0x37c   : > { %v722_v41 = vpop.xlane.xlu0 %721 }
 0x37d   : > { %726 = vst.msk [vmem:[%s303_s20 + $0x18] sm:$0xff] %vm698_vm6, %v722_v41 }
 0x37e PF: > { %s18_s24 = sadd.s32 1, %s984_s24  }
 0x37f   : > { %p15_p4 = scmp.ge.s32.totalorder %s18_s24, 4  }
 0x381   :  { %17 = sbr.rel (!%p15_p4) target bundleno = 1 (0x1), region = 94 }

// kernel: non_bottleneck_1d_fwd.4
= control target key start
LH: loop header
LB: loop body
LE: loop exit
PB: predicated region body
PF: predicated region fallthrough
CT: control target
= control target key end

     0   :  { %s1315_s17 = smov 0   ;;  %s1590_s0 = inlined_call_operand.vmem [shape: bf16[2,32,256], index: 0, kind: input, shape index: {}]   ;;  %s1591_s1 = inlined_call_operand.vmem [shape: f32[2,32,1], index: 1, kind: input, shape index: {}]   ;;  %s1592_s2 = inlined_call_operand.vmem [shape: f32[2,32,1], index: 2, kind: input, shape index: {}]   ;;  %s1593_s3 = inlined_call_operand.vmem [shape: f32[32,1], index: 3, kind: input, shape index: {}]   ;;  %s1594_s4 = inlined_call_operand.vmem [shape: f32[32,1], index: 4, kind: input, shape index: {}]   ;;  %s1595_s5 = inlined_call_operand.vmem [shape: bf16[24,96], index: 5, kind: input, shape index: {}]   ;;  %s1596_s6 = inlined_call_operand.vmem [shape: f32[24,1], index: 6, kind: input, shape index: {}]   ;;  %s1597_s7 = inlined_call_operand.vmem [shape: bf16[16,72], index: 7, kind: input, shape index: {}]   ;;  %s1598_s8 = inlined_call_operand.vmem [shape: f32[16,1], index: 8, kind: input, shape index: {}]   ;;  %s1599_s9 = inlined_call_operand.vmem [shape: bf16[2,16,256], index: 9, kind: output, shape index: {0}]   ;;  %s1600_s10 = inlined_call_operand.vmem [shape: f32[2,16,1], index: 10, kind: output, shape index: {1}]   ;;  %s1601_s11 = inlined_call_operand.vmem [shape: f32[2,16,1], index: 11, kind: output, shape index: {2}]  }
   0x1 LB: > { %s1084_s18 = sadd.s32 4294967295, %s1247_s17   ;;  %p1088_p0 = scmp.ge.s32.totalorder %s1247_s17, 1  ;;  %s1247_s17 = sphi %s1315_s17, %s22_s17  }
   0x2   : > { %p342_p1 = scmp.lt.s32.totalorder %s1247_s17, 3 }
   0x4   : > { %p343_p2 = pnand %p1088_p0, %p342_p1 }
   0x5   : > { %v416_v0 = vld [vmem:[%s1591_s1 + $0x18] sm:$0xff] (!%p343_p2)  ;;  %vm421_vm0 = vcmask (!%p343_p2), 7168   ;;  %v1249_v3 = vmov (!%p343_p2), 0   ;;  %v413_v8 = vld [vmem:[%s1591_s1] sm:$0xff] (!%p343_p2)  ;;  %v414_v19 = vld [vmem:[%s1591_s1 + $0x8] sm:$0xff] (!%p343_p2)  ;;  %p392_p3 = scmp.lt.s32.totalorder (!%p343_p2), %s1084_s18, 1 }
   0x6   : > { %346 = sbr.rel (%p343_p2) target bundleno = 1048 (0x418), region = 56  ;;  %v420_v1 = vld [vmem:[%s1591_s1 + $0x38] sm:$0xff] (!%p343_p2)  ;;  %1159 = vset.pattern.permute.xlu1 (!%p343_p2), %v1249_v3  ;;  %1158 = vset.pattern.permute.xlu0 (!%p343_p2), %v1249_v3  ;;  %v431_v4 = vsel (!%p343_p2), %vm421_vm0, %v416_v0, 0.0  ;;  %v417_v11 = vld [vmem:[%s1591_s1 + $0x20] sm:$0xff] (!%p343_p2)  ;;  %v422_v12 = vsel (!%p343_p2), %vm421_vm0, %v413_v8, 0.0  ;;  %v418_v20 = vld [vmem:[%s1591_s1 + $0x28] sm:$0xff] (!%p343_p2) }
   0x7   : > { %v437_v2 = vld [vmem:[%s1592_s2 + $0x18] sm:$0xff] (!%p343_p2)  ;;  %v432_v5 = vsel (!%p343_p2), %vm421_vm0, %v420_v1, 0.0  ;;  %v434_v13 = vld [vmem:[%s1592_s2] sm:$0xff] (!%p343_p2)  ;;  %735 = vmatprep.mubr.bf16.mxu0 (!%p343_p2), %v1249_v3  ;;  %918 = vmatprep.mubr.bf16.mxu1 (!%p343_p2), %v1249_v3  ;;  %v423_v16 = vsel (!%p343_p2), %vm421_vm0, %v417_v11, 0.0  ;;  %v425_v24 = vsel (!%p343_p2), %vm421_vm0, %v414_v19, 0.0  ;;  %v435_v25 = vld [vmem:[%s1592_s2 + $0x8] sm:$0xff] (!%p343_p2) }
   0x8   : > { %v441_v6 = vld [vmem:[%s1592_s2 + $0x38] sm:$0xff] (!%p343_p2)  ;;  %v451_v7 = vsel (!%p343_p2), %vm421_vm0, %v437_v2, 0.0  ;;  %v433_v9 = vadd.f32 (!%p343_p2), %v432_v5, %v431_v4  ;;  %v438_v14 = vld [vmem:[%s1592_s2 + $0x20] sm:$0xff] (!%p343_p2)  ;;  %v442_v17 = vsel (!%p343_p2), %vm421_vm0, %v434_v13, 0.0  ;;  %v424_v22 = vadd.f32 (!%p343_p2), %v423_v16, %v422_v12  ;;  %v439_v26 = vld [vmem:[%s1592_s2 + $0x28] sm:$0xff] (!%p343_p2)  ;;  %s1250_s20 = smov (!%p343_p2), 32  }
   0x9   : > { %v452_v10 = vsel (!%p343_p2), %vm421_vm0, %v441_v6, 0.0  ;;  %v443_v18 = vsel (!%p343_p2), %vm421_vm0, %v438_v14, 0.0  ;;  %v426_v28 = vsel (!%p343_p2), %vm421_vm0, %v418_v20, 0.0  ;;  %v445_v29 = vsel (!%p343_p2), %vm421_vm0, %v435_v25, 0.0  ;;  %v415_v31 = vld [vmem:[%s1591_s1 + $0x10] sm:$0xff] (!%p343_p2)  ;;  %v473_v61 = vld [vmem:[%s1593_s3 + $0x18] sm:$0xff] (!%p343_p2) }
   0xa   : > { %v453_v15 = vadd.f32 (!%p343_p2), %v452_v10, %v451_v7  ;;  %v1365_v21 = vmul.f32 (!%p343_p2), 0.001953125, %v433_v9  ;;  %v444_v23 = vadd.f32 (!%p343_p2), %v443_v18, %v442_v17  ;;  %v446_v30 = vsel (!%p343_p2), %vm421_vm0, %v439_v26, 0.0  ;;  %v419_v36 = vld [vmem:[%s1591_s1 + $0x30] sm:$0xff] (!%p343_p2)  ;;  %v470_v63 = vld [vmem:[%s1593_s3] sm:$0xff] (!%p343_p2)  ;;  %v471_v2 = vld [vmem:[%s1593_s3 + $0x8] sm:$0xff] (!%p343_p2)  ;;  %s1251_s21 = smov (!%p343_p2), 96  }
   0xb   : > { %v454_v33 = vmul.f32 (!%p343_p2), 0.001953125, %v424_v22  ;;  %v427_v35 = vadd.f32 (!%p343_p2), %v426_v28, %v425_v24  ;;  %v436_v37 = vld [vmem:[%s1592_s2 + $0x10] sm:$0xff] (!%p343_p2)  ;;  %v447_v39 = vadd.f32 (!%p343_p2), %v446_v30, %v445_v29  ;;  %v428_v40 = vsel (!%p343_p2), %vm421_vm0, %v415_v31, 0.0  ;;  %v486_v6 = vld [vmem:[%s1594_s4] sm:$0xff] (!%p343_p2)  ;;  %v487_v10 = vld [vmem:[%s1594_s4 + $0x8] sm:$0xff] (!%p343_p2)  ;;  %s1252_s13 = smov (!%p343_p2), 2  }
   0xc   : > { %v461_v27 = vmul.f32 (!%p343_p2), 0.001953125, %v453_v15  ;;  %v465_v32 = vmul.f32 (!%p343_p2), %v1365_v21, %v1365_v21  ;;  %v458_v34 = vmul.f32 (!%p343_p2), 0.001953125, %v444_v23  ;;  %v440_v38 = vld [vmem:[%s1592_s2 + $0x30] sm:$0xff] (!%p343_p2)  ;;  %v429_v41 = vsel (!%p343_p2), %vm421_vm0, %v419_v36, 0.0  ;;  %v489_v19 = vld [vmem:[%s1594_s4 + $0x18] sm:$0xff] (!%p343_p2) }
   0xd   : > { %v448_v42 = vsel %vm421_vm0, %v436_v37, 0.0  ;;  %v462_v44 = vmul.f32 %v454_v33, %v454_v33  ;;  %v455_v45 = vmul.f32 0.001953125, %v427_v35  ;;  %v430_v46 = vadd.f32 %v429_v41, %v428_v40  ;;  %v472_v9 = vld [vmem:[%s1593_s3 + $0x10] sm:$0xff]  ;;  %s1609_s18 = smov (!%p392_p3, %s1084_s18), 1 }
   0xe   : > { %v469_v43 = vsub.f32 %v461_v27, %v465_v32  ;;  %v459_v47 = vmul.f32 0.001953125, %v447_v39  ;;  %v449_v48 = vsel %vm421_vm0, %v440_v38, 0.0  ;;  %v488_v17 = vld [vmem:[%s1594_s4 + $0x10] sm:$0xff]  ;;  %s1138_s14 = sshll.u32 %s1609_s18, 5  ;;  %vm696_vm7 = vcmask 785408   ;;  %s1569_s23 = sshll.u32 %s1609_s18, 4 }
   0xf   : > { %v466_v50 = vsub.f32 %v458_v34, %v462_v44  ;;  %v463_v51 = vmul.f32 %v455_v45, %v455_v45  ;;  %v450_v52 = vadd.f32 %v449_v48, %v448_v42  ;;  %v456_v53 = vmul.f32 0.001953125, %v430_v46  ;;  %s396_s19 = scalar_lea.vmem %s1590_s0, %s1138_s14  ;;  %s1253_s14 = smov 126  }
  0x10   : > { %v477_v49 = vadd.f32 0.001, %v469_v43  ;;  %v498_v23 = vld [vmem:[%s396_s19] sm:$0xff]  ;;  %v499_v25 = vld [vmem:[%s396_s19 + $0x8] sm:$0xff]  ;;  %v501_v28 = vld [vmem:[%s396_s19 + $0x18] sm:$0xff]  ;;  %vm1254_vm13 = vmmov 1   ;;  %s401_s26 = scalar_lea.vmem %s1599_s9, %s1569_s23  ;;  %s406_s28 = scalar_lea.vmem %s1600_s10, %s1569_s23 }
  0x11   : > { %v474_v54 = vadd.f32 0.001, %v466_v50  ;;  %v467_v55 = vsub.f32 %v459_v47, %v463_v51  ;;  %v460_v56 = vmul.f32 0.001953125, %v450_v52  ;;  %v464_v57 = vmul.f32 %v456_v53, %v456_v53  ;;  %s411_s12 = scalar_lea.vmem %s1601_s11, %s1569_s23 }
  0x12   : > { %1233 = vrsqrt.f32 %v477_v49  ;;  %v502_v26 = vunpack.c.l.bf16 %v498_v23  ;;  %v503_v27 = vunpack.c.h.bf16 %v498_v23  ;;  %v504_v29 = vunpack.c.l.bf16 %v499_v25 }
  0x13   : > { %1235 = vrsqrt.f32 %v474_v54  ;;  %v475_v58 = vadd.f32 0.001, %v467_v55  ;;  %v468_v59 = vsub.f32 %v460_v56, %v464_v57  ;;  %v505_v30 = vunpack.c.h.bf16 %v499_v25 }
  0x14   : > { %v508_v34 = vunpack.c.l.bf16 %v501_v28  ;;  %v509_v35 = vunpack.c.h.bf16 %v501_v28 }
  0x15   : > { %1237 = vrsqrt.f32 %v475_v58  ;;  %v476_v60 = vadd.f32 0.001, %v468_v59 }
  0x17   : > { %1239 = vrsqrt.f32 %v476_v60 }
  0x1c   : > { %v1234_v62 = vpop.eup %1233 }
  0x1d   : > { %v485_v0 = vmul.f32 %v1234_v62, %v473_v61  ;;  %v1236_v1 = vpop.eup %1235 }
  0x1e   : > { %v482_v4 = vmul.f32 %v1236_v1, %v470_v63 }
  0x1f   : > { %527 = vperm.xlu1 %1159, %v485_v0   ;;  %v1238_v5 = vpop.eup %1237  ;;  %v493_v15 = vmul.f32 %v485_v0, %v1365_v21 }
  0x20   : > { %512 = vperm.xlu0 %1158, %v482_v4   ;;  %v490_v7 = vmul.f32 %v482_v4, %v454_v33  ;;  %v483_v8 = vmul.f32 %v1238_v5, %v471_v2  ;;  %v500_v33 = vld [vmem:[%s396_s19 + $0x10] sm:$0xff] }
  0x21   : > { %v1240_v11 = vpop.eup %1239  ;;  %v497_v22 = vsub.f32 %v489_v19, %v493_v15  ;;  %v506_v40 = vunpack.c.l.bf16 %v500_v33  ;;  %v507_v41 = vunpack.c.h.bf16 %v500_v33 }
  0x22   : > { %v494_v12 = vsub.f32 %v486_v6, %v490_v7  ;;  %v491_v13 = vmul.f32 %v483_v8, %v455_v45  ;;  %v484_v14 = vmul.f32 %v1240_v11, %v472_v9  ;;  %v581_v11 = vld [vmem:[%s1596_s6 + $0x8] sm:$0xff] }
  0x24   : > { %517 = vperm.xlu0 %1158, %v483_v8   ;;  %540 = vperm.xlu1 %1159, %v494_v12   ;;  %v495_v16 = vsub.f32 %v487_v10, %v491_v13  ;;  %v492_v18 = vmul.f32 %v484_v14, %v456_v53  ;;  %v580_v12 = vld [vmem:[%s1596_s6] sm:$0xff]  ;;  %v582_v13 = vld [vmem:[%s1596_s6 + $0x10] sm:$0xff] }
  0x26   : > { %v496_v20 = vsub.f32 %v488_v17, %v492_v18 }
  0x28   : > { %522 = vperm.xlu0 %1158, %v484_v14   ;;  %545 = vperm.xlu1 %1159, %v495_v16   ;;  %v574_v14 = vlaneseq }
  0x2a   : > { %v1445_v15 = vand.u32 127, %v574_v14 }
  0x2c   : > { %550 = vperm.xlu0 %1158, %v496_v20   ;;  %555 = vperm.xlu1 %1159, %v497_v22   ;;  %vm603_vm1 = vcmp.lt.s32.totalorder %v1445_v15, 32  ;;  %vm583_vm2 = vcmp.ge.s32.totalorder %v1445_v15, 32  ;;  %vm640_vm4 = vcmp.lt.s32.totalorder %v1445_v15, 96  ;;  %vm804_vm8 = vcmp.lt.s32.totalorder %v1445_v15, 2 }
  0x2d   : > { %vm1457_vm3 = vmpackc.low %vm583_vm2, %vm583_vm2  ;;  %vm833_vm15 = vcmp.lt.s32.totalorder %v1445_v15, 126 }
  0x9e   : > { %v528_v21 = vpop.permute.xlu1 %527 }
  0x9f   : > { %v513_v24 = vpop.permute.xlu0 %512  ;;  %v536_v48 = vmul.f32 %v528_v21, %v508_v34  ;;  %v537_v49 = vmul.f32 %v528_v21, %v509_v35 }
  0xa0   : > { %v530_v36 = vmul.f32 %v513_v24, %v502_v26  ;;  %v531_v37 = vmul.f32 %v513_v24, %v503_v27 }
  0xa3   : > { %v518_v31 = vpop.permute.xlu0 %517  ;;  %v541_v32 = vpop.permute.xlu1 %540 }
  0xa4   : > { %v532_v38 = vmul.f32 %v518_v31, %v504_v29  ;;  %v533_v39 = vmul.f32 %v518_v31, %v505_v30  ;;  %v558_v42 = vadd.f32 %v541_v32, %v530_v36  ;;  %v559_v43 = vadd.f32 %v541_v32, %v531_v37 }
  0xa6   : > { %v566_v54 = vmax.f32 %v558_v42, 0.0  ;;  %v567_v55 = vmax.f32 %v559_v43, 0.0  ;;  %v1472_v43 = vadd.s32 128, %v1445_v15 }
  0xa7   : > { %v523_v44 = vpop.permute.xlu0 %522  ;;  %v546_v45 = vpop.permute.xlu1 %545 }
  0xa8   : > { %v560_v46 = vadd.f32 %v546_v45, %v532_v38  ;;  %v561_v47 = vadd.f32 %v546_v45, %v533_v39  ;;  %v534_v50 = vmul.f32 %v523_v44, %v506_v40  ;;  %v535_v51 = vmul.f32 %v523_v44, %v507_v41 }
  0xa9   : > { %vm586_vm5 = vcmp.lt.s32.totalorder %v1472_v43, 224 }
  0xaa   : > { %v568_v52 = vmax.f32 %v560_v46, 0.0  ;;  %v569_v53 = vmax.f32 %v561_v47, 0.0  ;;  %vm1105_vm6 = vmpackc.low %vm586_vm5, %vm586_vm5 }
  0xab   : > { %v551_v56 = vpop.permute.xlu0 %550  ;;  %v556_v57 = vpop.permute.xlu1 %555 }
  0xac   : > { %v562_v58 = vadd.f32 %v551_v56, %v534_v50  ;;  %v563_v59 = vadd.f32 %v551_v56, %v535_v51  ;;  %v564_v60 = vadd.f32 %v556_v57, %v536_v48  ;;  %v565_v61 = vadd.f32 %v556_v57, %v537_v49 }
  0xad   : > { %v1165_v62 = vpack.i.bf16 %v569_v53, %v567_v55  ;;  %v1160_v63 = vpack.i.bf16 %v568_v52, %v566_v54  ;;  %v666_v5 = vpack.c.bf16 %v569_v53, %v567_v55  ;;  %v1430_v6 = vpack.c.bf16 %v568_v52, %v566_v54 }
  0xae   : > { %v570_v0 = vmax.f32 %v562_v58, 0.0  ;;  %v571_v1 = vmax.f32 %v563_v59, 0.0  ;;  %v572_v2 = vmax.f32 %v564_v60, 0.0  ;;  %v573_v4 = vmax.f32 %v565_v61, 0.0 }
  0xaf   : > { %1166 = vrot.lane.b32.xlu1 %v1165_v62, %s1250_s20  ;;  %1161 = vrot.lane.b32.xlu0 %v1160_v63, %s1250_s20 }
  0xb0   : > { %v1175_v7 = vpack.i.bf16 %v573_v4, %v571_v1  ;;  %v1170_v8 = vpack.i.bf16 %v572_v2, %v570_v0  ;;  %v1432_v9 = vpack.c.bf16 %v573_v4, %v571_v1  ;;  %v1434_v10 = vpack.c.bf16 %v572_v2, %v570_v0  ;;  %v1230_v2 = vld [vmem:[%s1595_s5] sm:$0xff]   ;;  %v1231_v4 = vld [vmem:[%s1595_s5 + $0x8] ss:$0 sps:$4 sm:$0xff]  }
  0xb3   : > { %1176 = vrot.lane.b32.xlu1 %v1175_v7, %s1250_s20  ;;  %1171 = vrot.lane.b32.xlu0 %v1170_v8, %s1250_s20 }
  0xb7   : > { %1186 = vrot.lane.b32.xlu1 %v1165_v62, %s1251_s21  ;;  %1181 = vrot.lane.b32.xlu0 %v1160_v63, %s1251_s21 }
  0xbb   : > { %1196 = vrot.lane.b32.xlu1 %v1175_v7, %s1251_s21  ;;  %1191 = vrot.lane.b32.xlu0 %v1170_v8, %s1251_s21 }
  0xbf   : > { %680 = vperm.xlu1 %1159, %v581_v11   ;;  %675 = vperm.xlu0 %1158, %v580_v12  }
  0xc3   : > { %685 = vperm.xlu0 %1158, %v582_v13  }
 0x121   : > { %v1167_v16 = vpop.permute.xlu1 %1166  ;;  %v1162_v17 = vpop.permute.xlu0 %1161 }
 0x122   : > { %v1169_v18 = vunpack.i.h.bf16 %v1167_v16  ;;  %v1168_v19 = vunpack.i.l.bf16 %v1167_v16  ;;  %v1164_v20 = vunpack.i.h.bf16 %v1162_v17  ;;  %v1163_v22 = vunpack.i.l.bf16 %v1162_v17 }
 0x124   : > { %v604_v21 = vsel %vm603_vm1, %v1163_v22, %v1168_v19  ;;  %v605_v23 = vsel %vm603_vm1, %v1164_v20, %v1169_v18  ;;  %v608_v24 = vsel %vm603_vm1, %v1168_v19, %v1163_v22  ;;  %v609_v25 = vsel %vm603_vm1, %v1169_v18, %v1164_v20 }
 0x125   : > { %v1177_v26 = vpop.permute.xlu1 %1176  ;;  %v1172_v27 = vpop.permute.xlu0 %1171  ;;  %v662_v28 = vpack.c.bf16 %v605_v23, %v604_v21  ;;  %v1100_v30 = vpack.c.bf16 %v609_v25, %v608_v24 }
 0x126   : > { %v1179_v31 = vunpack.i.h.bf16 %v1177_v26  ;;  %v1178_v32 = vunpack.i.l.bf16 %v1177_v26  ;;  %v1174_v33 = vunpack.i.h.bf16 %v1172_v27  ;;  %v1173_v34 = vunpack.i.l.bf16 %v1172_v27 }
 0x127   : > { %703 = vmatprep.subr.bf16.mxu0 %v662_v28 }
 0x128   : > { %v611_v35 = vsel %vm603_vm1, %v1179_v31, %v1174_v33  ;;  %v610_v36 = vsel %vm603_vm1, %v1178_v32, %v1173_v34  ;;  %1101 = vmatpush1.bf16.msk.msra.mxu0 %vm1457_vm3, %v1100_v30  ;;  %v606_v37 = vsel %vm603_vm1, %v1173_v34, %v1178_v32  ;;  %v607_v38 = vsel %vm603_vm1, %v1174_v33, %v1179_v31  ;;  %v787_v33 = vld [vmem:[%s1598_s8 + $0x8] sm:$0xff]  ;;  %v786_v34 = vld [vmem:[%s1598_s8] sm:$0xff] }
 0x129   : > { %v1103_v39 = vpack.c.bf16 %v611_v35, %v610_v36  ;;  %v1187_v40 = vpop.permute.xlu1 %1186  ;;  %v1182_v41 = vpop.permute.xlu0 %1181  ;;  %v664_v42 = vpack.c.bf16 %v607_v38, %v606_v37  ;;  %v771_v35 = vand.u32 15, %v1472_v43  ;;  %v764_v36 = vand.u32 15, %v1445_v15  ;;  %v1232_v15 = vld [vmem:[%s1597_s7] sm:$0xff]  }
 0x12a   : > { %v1189_v44 = vunpack.i.h.bf16 %v1187_v40  ;;  %v1188_v45 = vunpack.i.l.bf16 %v1187_v40  ;;  %v1184_v46 = vunpack.i.h.bf16 %v1182_v41  ;;  %v1183_v47 = vunpack.i.l.bf16 %v1182_v41 }
 0x12b   : > { %705 = vmatprep.subr.bf16.mxu0 %v664_v42  ;;  %vm1521_vm9 = vcmp.ge.s32.totalorder %v771_v35, 2  ;;  %vm1525_vm10 = vcmp.ge.s32.totalorder %v764_v36, 2  ;;  %vm791_vm2 = vcmp.lt.s32.totalorder %v771_v35, 14 }
 0x12c   : > { %1104 = vmatpush1.bf16.msk.msra.mxu0 %vm1457_vm3, %v1103_v39  ;;  %v646_v50 = vsel %vm640_vm4, %v1189_v44, %v1184_v46  ;;  %v645_v51 = vsel %vm640_vm4, %v1188_v45, %v1183_v47  ;;  %v641_v57 = vsel %vm640_vm4, %v1183_v47, %v1188_v45  ;;  %v642_v58 = vsel %vm640_vm4, %v1184_v46, %v1189_v44  ;;  %vm1114_vm11 = vmpackc.low %vm1521_vm9, %vm1521_vm9 }
 0x12d   : > { %v1197_v48 = vpop.permute.xlu1 %1196  ;;  %v1192_v49 = vpop.permute.xlu0 %1191  ;;  %707 = vmatprep.subr.bf16.mxu0 %v666_v5  ;;  %v1106_v56 = vpack.c.bf16 %v646_v50, %v645_v51  ;;  %v669_v61 = vpack.c.bf16 %v642_v58, %v641_v57  ;;  %vm1117_vm12 = vmpackc.low %vm1525_vm10, %vm1525_vm10  ;;  %vm790_vm3 = vcmp.lt.s32.totalorder %v764_v36, 14 }
 0x12e   : > { %v1199_v52 = vunpack.i.h.bf16 %v1197_v48  ;;  %v1198_v53 = vunpack.i.l.bf16 %v1197_v48  ;;  %v1194_v54 = vunpack.i.h.bf16 %v1192_v49  ;;  %v1193_v55 = vunpack.i.l.bf16 %v1192_v49  ;;  %vm1120_vm14 = vmpackc.low %vm1254_vm13, %vm1521_vm9 }
 0x12f   : > { %vm1123_vm1 = vmpackc.low %vm1254_vm13, %vm1525_vm10 }
 0x130   : > { %708 = vmatpush1.bf16.msra.mxu0 %v1430_v6  ;;  %v648_v59 = vsel %vm640_vm4, %v1199_v52, %v1194_v54  ;;  %v647_v60 = vsel %vm640_vm4, %v1198_v53, %v1193_v55  ;;  %v643_v63 = vsel %vm640_vm4, %v1193_v55, %v1198_v53  ;;  %v644_v0 = vsel %vm640_vm4, %v1194_v54, %v1199_v52  ;;  %vm1126_vm4 = vmpackc.low %vm791_vm2, %vm791_vm2 }
 0x131   : > { %709 = vmatprep.subr.bf16.mxu0 %v1432_v9  ;;  %v1109_v62 = vpack.c.bf16 %v648_v59, %v647_v60  ;;  %v671_v1 = vpack.c.bf16 %v644_v0, %v643_v63  ;;  %vm1129_vm5 = vmpackc.low %vm790_vm3, %vm790_vm3 }
 0x134   : > { %710 = vmatpush1.bf16.msra.mxu0 %v1434_v10 }
 0x135   : > { %1107 = vmatprep.subr.msk.bf16.mxu0 %vm1105_vm6, %v1106_v56 }
 0x138   : > { %712 = vmatpush1.bf16.msra.mxu0 %v669_v61 }
 0x139   : > { %1110 = vmatprep.subr.msk.bf16.mxu0 %vm1105_vm6, %v1109_v62  ;;  %vm879_vm6 = vcmask 1043456  }
 0x13c   : > { %714 = vmatpush1.bf16.msra.mxu0 %v671_v1 }
 0x13e   : > { %v676_v5 = vpop.permute.xlu0 %675  ;;  %v681_v9 = vpop.permute.xlu1 %680 }
 0x13f   : > { %1111 = vmatmul.mubr.msk.bf16.vlgmr.msra.gmra.mrb[0].mxu0 %vm696_vm7, %v1230_v2 }
 0x140   : > { %745 = vmatprep.mubr.bf16.mxu0 %v1249_v3 }
 0x142   : > { %v686_v20 = vpop.permute.xlu0 %685 }
 0x147   : > { %1112 = vmatmul.mubr.msk.bf16.gmra.mrb[4].mxu0 %vm696_vm7, %v1231_v4  ;;  %vm875_vm7 = vcmask 588800  }
 0x212   : > { %v737_v6 = vpop.f32.mrb[0].mxu0 }
 0x213   : > { %v1504_v7 = vadd.f32 %v737_v6, %v676_v5  ;;  %v739_v8 = vpop.f32.mrb[1].mxu0 }
 0x214   : > { %v1506_v10 = vadd.f32 %v739_v8, %v676_v5  ;;  %v741_v11 = vpop.f32.mrb[2].mxu0 }
 0x215   : > { %v742_v12 = vadd.f32 %v741_v11, %v681_v9  ;;  %v743_v13 = vpop.f32.mrb[3].mxu0  ;;  %v754_v16 = vmax.f32 %v1504_v7, 0.0 }
 0x216   : > { %v744_v14 = vadd.f32 %v743_v13, %v681_v9  ;;  %v755_v17 = vmax.f32 %v1506_v10, 0.0 }
 0x217   : > { %v756_v3 = vmax.f32 %v742_v12, 0.0 }
 0x218   : > { %v757_v18 = vmax.f32 %v744_v14, 0.0 }
 0x219   : > { %v1200_v19 = vpack.i.bf16 %v756_v3, %v754_v16 }
 0x21a   : > { %v747_v22 = vpop.f32.mrb[4].mxu0  ;;  %v1205_v21 = vpack.i.bf16 %v757_v18, %v755_v17 }
 0x21b   : > { %v748_v23 = vadd.f32 %v747_v22, %v686_v20  ;;  %v749_v24 = vpop.f32.mrb[5].mxu0  ;;  %1201 = vrot.lane.b32.xlu1 %v1200_v19, %s1252_s13 }
 0x21c   : > { %v750_v25 = vadd.f32 %v749_v24, %v686_v20  ;;  %v751_v26 = vpop.f32.mrb[6].mxu0  ;;  %1206 = vrot.lane.b32.xlu0 %v1205_v21, %s1252_s13 }
 0x21d   : > { %v758_v27 = vmax.f32 %v748_v23, 0.0  ;;  %v752_v28 = vpop.f32.mrb[7].mxu0 }
 0x21e   : > { %v759_v29 = vmax.f32 %v750_v25, 0.0 }
 0x21f   : > { %v1510_v30 = vpack.c.bf16 %v758_v27, %v756_v3 }
 0x220   : > { %1216 = vrot.lane.b32.xlu0 %v1200_v19, %s1253_s14  ;;  %v1210_v31 = vpack.i.bf16 %v759_v29, %v758_v27  ;;  %v855_v32 = vpack.c.bf16 %v759_v29, %v757_v18 }
 0x222   : > { %1211 = vrot.lane.b32.xlu1 %v1210_v31, %s1252_s13 }
 0x224   : > { %1226 = vrot.lane.b32.xlu0 %v1210_v31, %s1253_s14 }
 0x226   : > { %1221 = vrot.lane.b32.xlu1 %v1205_v21, %s1253_s14 }
 0x228   : > { %867 = vperm.xlu0 %1158, %v787_v33  }
 0x22a   : > { %862 = vperm.xlu1 %1159, %v786_v34  }
 0x28d   : > { %v1202_v37 = vpop.permute.xlu1 %1201 }
 0x28e   : > { %v1204_v38 = vunpack.i.h.bf16 %v1202_v37  ;;  %v1203_v39 = vunpack.i.l.bf16 %v1202_v37  ;;  %v1207_v40 = vpop.permute.xlu0 %1206 }
 0x28f   : > { %v1209_v42 = vunpack.i.h.bf16 %v1207_v40  ;;  %v1208_v44 = vunpack.i.l.bf16 %v1207_v40 }
 0x291   : > { %v805_v43 = vsel %vm804_vm8, %v1203_v39, %v1208_v44  ;;  %v806_v46 = vsel %vm804_vm8, %v1204_v38, %v1209_v42  ;;  %v808_v47 = vsel %vm804_vm8, %v1208_v44, %v1203_v39  ;;  %v809_v48 = vsel %vm804_vm8, %v1209_v42, %v1204_v38 }
 0x292   : > { %v1217_v49 = vpop.permute.xlu0 %1216  ;;  %v1115_v50 = vpack.c.bf16 %v806_v46, %v805_v43  ;;  %v1118_v51 = vpack.c.bf16 %v809_v48, %v808_v47 }
 0x293   : > { %v1219_v63 = vunpack.i.h.bf16 %v1217_v49  ;;  %v1218_v0 = vunpack.i.l.bf16 %v1217_v49 }
 0x294   : > { %v1212_v52 = vpop.permute.xlu1 %1211  ;;  %1116 = vmatprep.subr.msk.bf16.mxu1 %vm1114_vm11, %v1115_v50 }
 0x295   : > { %v1214_v53 = vunpack.i.h.bf16 %v1212_v52  ;;  %v1213_v54 = vunpack.i.l.bf16 %v1212_v52  ;;  %1119 = vmatpush1.bf16.msk.msra.mxu1 %vm1117_vm12, %v1118_v51 }
 0x296   : > { %v1227_v55 = vpop.permute.xlu0 %1226 }
 0x297   : > { %v807_v56 = vsel %vm804_vm8, %v1213_v54, %v1214_v53  ;;  %v810_v57 = vsel %vm804_vm8, %v1214_v53, %v1213_v54  ;;  %v1229_v60 = vunpack.i.h.bf16 %v1227_v55  ;;  %v1228_v61 = vunpack.i.l.bf16 %v1227_v55 }
 0x298   : > { %v1121_v58 = vpack.c.bf16 %v755_v17, %v807_v56  ;;  %v1124_v59 = vpack.c.bf16 %v754_v16, %v810_v57  ;;  %v1222_v62 = vpop.permute.xlu1 %1221 }
 0x299   : > { %v1224_v1 = vunpack.i.h.bf16 %v1222_v62  ;;  %v1223_v2 = vunpack.i.l.bf16 %v1222_v62  ;;  %v839_v6 = vsel %vm833_vm15, %v1229_v60, %v1228_v61  ;;  %v836_v7 = vsel %vm833_vm15, %v1228_v61, %v1229_v60 }
 0x29a   : > { %1122 = vmatprep.subr.msk.bf16.mxu1 %vm1120_vm14, %v1121_v58  ;;  %v849_v11 = vsel %vm791_vm2, %v839_v6, 0.0  ;;  %v848_v12 = vsel %vm790_vm3, %v836_v7, 0.0 }
 0x29b   : > { %v838_v4 = vsel %vm833_vm15, %v1224_v1, %v1219_v63  ;;  %v837_v5 = vsel %vm833_vm15, %v1223_v2, %v1218_v0  ;;  %1125 = vmatpush1.bf16.msk.msra.mxu1 %vm1123_vm1, %v1124_v59  ;;  %v835_v8 = vsel %vm833_vm15, %v1219_v63, %v1224_v1  ;;  %v834_v9 = vsel %vm833_vm15, %v1218_v0, %v1223_v2 }
 0x29c   : > { %890 = vmatprep.subr.bf16.mxu1 %v855_v32  ;;  %v1127_v10 = vpack.c.bf16 %v838_v4, %v837_v5  ;;  %v1130_v13 = vpack.c.bf16 %v835_v8, %v834_v9  ;;  %v859_v14 = vpack.c.bf16 %v849_v11, %v849_v11  ;;  %v858_v16 = vpack.c.bf16 %v848_v12, %v848_v12 }
 0x29e   : > { %v881_v3 = vsel %vm879_vm6, %v858_v16, 0 }
 0x29f   : > { %891 = vmatpush1.bf16.msra.mxu1 %v1510_v30 }
 0x2a0   : > { %1128 = vmatprep.subr.msk.bf16.mxu1 %vm1126_vm4, %v1127_v10 }
 0x2a3   : > { %1131 = vmatpush1.bf16.msk.msra.mxu1 %vm1129_vm5, %v1130_v13 }
 0x2a4   : > { %1132 = vmatprep.subr.msk.bf16.mxu1 %vm879_vm6, %v859_v14 }
 0x2a7   : > { %895 = vmatpush1.bf16.msra.mxu1 %v881_v3  ;;  %v868_v22 = vpop.permute.xlu0 %867 }
 0x2a9   : > { %v863_v17 = vpop.permute.xlu1 %862 }
 0x2aa   : > { %1133 = vmatmul.mubr.msk.bf16.vlgmr.msra.gmra.mrb[0].mxu1 %vm875_vm7, %v1232_v15 }
 0x37d   : > { %v920_v18 = vpop.f32.mrb[0].mxu1 }
 0x37e   : > { %v921_v19 = vadd.f32 %v920_v18, %v863_v17  ;;  %v922_v20 = vpop.f32.mrb[1].mxu1 }
 0x37f   : > { %v923_v21 = vadd.f32 %v922_v20, %v863_v17  ;;  %v924_v23 = vpop.f32.mrb[2].mxu1 }
 0x380   : > { %v925_v24 = vadd.f32 %v924_v23, %v868_v22  ;;  %v926_v25 = vpop.f32.mrb[3].mxu1  ;;  %v951_v26 = vmul.f32 %v921_v19, %v921_v19 }
 0x381   : > { %v1142_v27 = vpack.c.bf16 %v923_v21, %v921_v19  ;;  %v927_v28 = vadd.f32 %v926_v25, %v868_v22  ;;  %v943_v29 = vadd.f32 %v923_v21, %v921_v19  ;;  %v952_v30 = vmul.f32 %v923_v21, %v923_v21 }
 0x382   : > { %v953_v31 = vmul.f32 %v925_v24, %v925_v24 }
 0x383   : > { %v1143_v32 = vpack.c.bf16 %v927_v28, %v925_v24  ;;  %944 = vadd.xlane.f32.xlu1 %v943_v29  ;;  %v946_v33 = vadd.f32 %v927_v28, %v925_v24  ;;  %v954_v34 = vmul.f32 %v927_v28, %v927_v28  ;;  %v955_v35 = vadd.f32 %v952_v30, %v951_v26 }
 0x384   : > { %941 = vst [vmem:[%s401_s26] sm:$0xff] %v1142_v27 }
 0x385   : > { %947 = vadd.xlane.f32.xlu0 %v946_v33  ;;  %v958_v36 = vadd.f32 %v954_v34, %v953_v31  ;;  %942 = vst [vmem:[%s401_s26 + $0x8] sm:$0xff] %v1143_v32 }
 0x387   : > { %959 = vadd.xlane.f32.xlu1 %v958_v36 }
 0x389   : > { %956 = vadd.xlane.f32.xlu0 %v955_v35 }
 0x410   : > { %v945_v37 = vpop.xlane.xlu1 %944 }
 0x411   : > { %949 = vst.msk [vmem:[%s406_s28] sm:$0xff] %vm421_vm0, %v945_v37 }
 0x412   : > { %v948_v38 = vpop.xlane.xlu0 %947 }
 0x413   : > { %950 = vst.msk [vmem:[%s406_s28 + $0x8] sm:$0xff] %vm421_vm0, %v948_v38 }
 0x414   : > { %v960_v39 = vpop.xlane.xlu1 %959 }
 0x415   : > { %962 = vst.msk [vmem:[%s411_s12 + $0x8] sm:$0xff] %vm421_vm0, %v960_v39 }
 0x416   : > { %v957_v40 = vpop.xlane.xlu0 %956 }
 0x417   : > { %961 = vst.msk [vmem:[%s411_s12] sm:$0xff] %vm421_vm0, %v957_v40 }
 0x418 PF: > { %s22_s17 = sadd.s32 1, %s1247_s17  }
 0x419   : > { %p19_p4 = scmp.ge.s32.totalorder %s22_s17, 4  }
 0x41b   :  { %21 = sbr.rel (!%p19_p4) target bundleno = 1 (0x1), region = 110 }

</bundles_post_ra>
